<compile_context>
chip_gen: v7x
topology: tpu7x:2x2x1
jax: 0.10.0
libtpu: 0.0.40
codegen_flags: <defaults>
</compile_context>

<pallas_src>
import jax
import jax.numpy as jnp
from jax.experimental import pallas as pl
from jax.experimental.pallas import tpu as pltpu

IN_DIM = 3200
HID_DIM = 1024
OUT_DIM = 10
NUM_SLICES = 4                      # hidden-dim split -> pipelined w1 streaming
HID_SLICE = HID_DIM // NUM_SLICES   # 256


def fused_mlp_kernel(x_ref, w1_ref, b1_ref, w2_ref, b2_ref, out_ref, acc_ref):
    """One hidden slice: acc += relu(x @ w1_s + b1_s) @ w2_s; finalize on last."""
    h_idx = pl.program_id(1)

    @pl.when(h_idx == 0)
    def _():
        acc_ref[...] = jnp.zeros_like(acc_ref)

    # fc1 slice: bf16 x bf16 -> f32 accumulation on the MXU.
    h = jnp.dot(x_ref[...], w1_ref[...], preferred_element_type=jnp.float32)
    h = jnp.maximum(h + b1_ref[...], 0.0)
    # fc2 slice (f32, tiny): partial logits accumulated across hidden slices.
    acc_ref[...] += jnp.dot(h, w2_ref[...], preferred_element_type=jnp.float32)

    @pl.when(h_idx == pl.num_programs(1) - 1)
    def _():
        logits = acc_ref[...] + b2_ref[...]
        m = jnp.max(logits, axis=-1, keepdims=True)
        shifted = logits - m
        lse = jnp.log(jnp.sum(jnp.exp(shifted), axis=-1, keepdims=True))
        out_ref[...] = (shifted - lse).astype(out_ref.dtype)


def _pick_batch_block(B):
    if B <= 256:
        return B
    for cand in (256, 128, 64, 32, 16, 8):
        if B % cand == 0:
            return cand
    return B  # fallback: fully resident (block equals full dim -> still valid)


def net_forward(x, w1, b1, w2, b2):
    B = x.shape[0]
    b_block = _pick_batch_block(B)
    nb = B // b_block if B % b_block == 0 else 1

    # Cast the two big HBM streams once; accumulation stays f32 in-kernel.
    x_lo = x.astype(jnp.bfloat16)
    w1_lo = w1.astype(jnp.bfloat16)

    cost = pl.CostEstimate(
        flops=2 * B * IN_DIM * HID_DIM + 2 * B * HID_DIM * OUT_DIM,
        transcendentals=B * (OUT_DIM + 1),
        bytes_accessed=(x_lo.size * 2 + w1_lo.size * 2
                        + b1.size * 4 + w2.size * 4 + b2.size * 4
                        + B * OUT_DIM * 4),
    )

    out = pl.pallas_call(
        fused_mlp_kernel,
        out_shape=jax.ShapeDtypeStruct((B, OUT_DIM), jnp.float32),
        grid_spec=pltpu.PrefetchScalarGridSpec(
            num_scalar_prefetch=0,
            grid=(nb, NUM_SLICES),
            in_specs=[
                pl.BlockSpec((b_block, IN_DIM), lambda b, h: (b, 0)),       # x
                pl.BlockSpec((IN_DIM, HID_SLICE), lambda b, h: (0, h)),     # w1 slice
                pl.BlockSpec((1, HID_SLICE), lambda b, h: (0, h)),          # b1 slice
                pl.BlockSpec((HID_SLICE, OUT_DIM), lambda b, h: (h, 0)),    # w2 slice
                pl.BlockSpec((1, OUT_DIM), lambda b, h: (0, 0)),            # b2
            ],
            out_specs=pl.BlockSpec((b_block, OUT_DIM), lambda b, h: (b, 0)),
            scratch_shapes=[pltpu.VMEM((b_block, OUT_DIM), jnp.float32)],
        ),
        compiler_params=pltpu.CompilerParams(
            dimension_semantics=("parallel", "arbitrary"),
            vmem_limit_bytes=32 << 20,
        ),
        cost_estimate=cost,
    )(x_lo, w1_lo, b1, w2, b2)

    return out


def init_params(key):
    """Deterministic init mimicking PyTorch Linear default (uniform +-1/sqrt(fan_in))."""
    k1, k2, k3, k4 = jax.random.split(key, 4)
    bound1 = 1.0 / (IN_DIM ** 0.5)
    bound2 = 1.0 / (HID_DIM ** 0.5)
    w1 = jax.random.uniform(k1, (IN_DIM, HID_DIM), jnp.float32, -bound1, bound1)
    b1 = jax.random.uniform(k2, (1, HID_DIM), jnp.float32, -bound1, bound1)
    w2 = jax.random.uniform(k3, (HID_DIM, OUT_DIM), jnp.float32, -bound2, bound2)
    b2 = jax.random.uniform(k4, (1, OUT_DIM), jnp.float32, -bound2, bound2)
    return w1, b1, w2, b2


def reference(x, w1, b1, w2, b2):
    h = jnp.maximum(x @ w1 + b1, 0.0)
    logits = h @ w2 + b2
    return jax.nn.log_softmax(logits, axis=-1)


if __name__ == "__main__":
    key = jax.random.PRNGKey(0)
    kx, kp = jax.random.split(key)
    B = 2
    x = jax.random.normal(kx, (B, IN_DIM), jnp.float32)
    w1, b1, w2, b2 = init_params(kp)

    out = net_forward(x, w1, b1, w2, b2)
    out = jax.block_until_ready(out)

    ref = reference(x, w1, b1, w2, b2)
    assert out.shape == (B, OUT_DIM)
    # bf16 weight/activation streaming (f32 accumulation) -> loosened tolerance.
    assert jnp.allclose(out, ref, atol=3e-2, rtol=3e-2), "mismatch vs reference"

    print("KERNEL_OK")
</pallas_src>

<mosaic_0001>
module attributes {stable_mosaic.version = 11 : i64} {
  func.func @fused_mlp_kernel(%arg0: i32, %arg1: i32, %arg2: memref<2x3200xbf16, #tpu.memory_space<vmem>>, %arg3: memref<3200x256xbf16, #tpu.memory_space<vmem>>, %arg4: memref<1x256xf32, #tpu.memory_space<vmem>>, %arg5: memref<256x10xf32, #tpu.memory_space<vmem>>, %arg6: memref<1x10xf32, #tpu.memory_space<vmem>>, %arg7: memref<2x10xf32, #tpu.memory_space<vmem>>, %arg8: memref<2x10xf32, #tpu.memory_space<vmem>>) attributes {dimension_semantics = [#tpu.dimension_semantics<parallel>, #tpu.dimension_semantics<arbitrary>], iteration_bounds = array<i64: 1, 4>, scalar_prefetch = 0 : i64, scratch_operands = 1 : i64, tpu.core_type = #tpu.core_type<tc>, window_params = [{transform_indices = @transform_0, window_bounds = array<i64: 2, 3200>}, {transform_indices = @transform_1, window_bounds = array<i64: 3200, 256>}, {transform_indices = @transform_2, window_bounds = array<i64: 1, 256>}, {transform_indices = @transform_3, window_bounds = array<i64: 256, 10>}, {pipeline_mode = #tpu.pipeline_mode<synchronous>, transform_indices = @transform_4, window_bounds = array<i64: 1, 10>}, {transform_indices = @transform_5, window_bounds = array<i64: 2, 10>}]} {
    %c0_i32 = arith.constant 0 : i32
    %0 = arith.cmpi eq, %arg1, %c0_i32 : i32
    %1 = arith.extui %0 : i1 to i32
    %c0_i32_0 = arith.constant 0 : i32
    %2 = arith.cmpi ne, %1, %c0_i32_0 : i32
    scf.if %2 {
      %cst_15 = arith.constant 0.000000e+00 : f32
      %19 = vector.broadcast %cst_15 : f32 to vector<2x10xf32>
      %c0_16 = arith.constant 0 : index
      %c0_17 = arith.constant 0 : index
      %20 = vector.load %arg8[%c0_16, %c0_17] : memref<2x10xf32, #tpu.memory_space<vmem>>, vector<2x10xf32>
      tpu.vector_store %arg8[%c0_16, %c0_17], %19 {strides = array<i32>} : memref<2x10xf32, #tpu.memory_space<vmem>>, vector<2x10xf32>,
    } else {
    }
    %c0 = arith.constant 0 : index
    %c0_1 = arith.constant 0 : index
    %3 = vector.load %arg2[%c0, %c0_1] : memref<2x3200xbf16, #tpu.memory_space<vmem>>, vector<2x3200xbf16>
    %c0_2 = arith.constant 0 : index
    %c0_3 = arith.constant 0 : index
    %4 = vector.load %arg3[%c0_2, %c0_3] : memref<3200x256xbf16, #tpu.memory_space<vmem>>, vector<3200x256xbf16>
    %cst = arith.constant dense<0.000000e+00> : vector<2x256xf32>
    %5 = tpu.matmul %3, %4, %cst {dimension_numbers = #tpu.dot_dimension_numbers<[1], [0], [0], [1], [0, 0, 1, 1], [], []>} : vector<2x3200xbf16>, vector<3200x256xbf16>, vector<2x256xf32> -> vector<2x256xf32>
    %c0_4 = arith.constant 0 : index
    %c0_5 = arith.constant 0 : index
    %6 = vector.load %arg4[%c0_4, %c0_5] : memref<1x256xf32, #tpu.memory_space<vmem>>, vector<1x256xf32>
    %7 = vector.broadcast %6 : vector<1x256xf32> to vector<2x256xf32>
    %8 = arith.addf %5, %7 : vector<2x256xf32>
    %cst_6 = arith.constant 0.000000e+00 : f32
    %9 = vector.broadcast %cst_6 : f32 to vector<2x256xf32>
    %10 = arith.maximumf %8, %9 : vector<2x256xf32>
    %c0_7 = arith.constant 0 : index
    %c0_8 = arith.constant 0 : index
    %11 = vector.load %arg8[%c0_7, %c0_8] : memref<2x10xf32, #tpu.memory_space<vmem>>, vector<2x10xf32>
    %c0_9 = arith.constant 0 : index
    %c0_10 = arith.constant 0 : index
    %12 = vector.load %arg5[%c0_9, %c0_10] : memref<256x10xf32, #tpu.memory_space<vmem>>, vector<256x10xf32>
    %cst_11 = arith.constant dense<0.000000e+00> : vector<2x10xf32>
    %13 = tpu.matmul %10, %12, %cst_11 {dimension_numbers = #tpu.dot_dimension_numbers<[1], [0], [0], [1], [0, 0, 1, 1], [], []>} : vector<2x256xf32>, vector<256x10xf32>, vector<2x10xf32> -> vector<2x10xf32>
    %14 = arith.addf %11, %13 : vector<2x10xf32>
    %c0_12 = arith.constant 0 : index
    %c0_13 = arith.constant 0 : index
    %15 = vector.load %arg8[%c0_12, %c0_13] : memref<2x10xf32, #tpu.memory_space<vmem>>, vector<2x10xf32>
    tpu.vector_store %arg8[%c0_12, %c0_13], %14 {strides = array<i32>} : memref<2x10xf32, #tpu.memory_space<vmem>>, vector<2x10xf32>,
    %c3_i32 = arith.constant 3 : i32
    %16 = arith.cmpi eq, %arg1, %c3_i32 : i32
    %17 = arith.extui %16 : i1 to i32
    %c0_i32_14 = arith.constant 0 : i32
    %18 = arith.cmpi ne, %17, %c0_i32_14 : i32
    scf.if %18 {
      %c0_15 = arith.constant 0 : index
      %c0_16 = arith.constant 0 : index
      %19 = vector.load %arg8[%c0_15, %c0_16] : memref<2x10xf32, #tpu.memory_space<vmem>>, vector<2x10xf32>
      %c0_17 = arith.constant 0 : index
      %c0_18 = arith.constant 0 : index
      %20 = vector.load %arg6[%c0_17, %c0_18] : memref<1x10xf32, #tpu.memory_space<vmem>>, vector<1x10xf32>
      %21 = vector.broadcast %20 : vector<1x10xf32> to vector<2x10xf32>
      %22 = arith.addf %19, %21 : vector<2x10xf32>
      %cst_19 = arith.constant dense<0xFF800000> : vector<2xf32>
      %23 = vector.multi_reduction <maximumf>, %22, %cst_19 [1] : vector<2x10xf32> to vector<2xf32>
      %24 = vector.shape_cast %23 : vector<2xf32> to vector<2x1xf32>
      %25 = vector.broadcast %24 : vector<2x1xf32> to vector<2x10xf32>
      %26 = arith.subf %22, %25 : vector<2x10xf32>
      %27 = math.exp %26 : vector<2x10xf32>
      %cst_20 = arith.constant dense<0.000000e+00> : vector<2xf32>
      %28 = vector.multi_reduction <add>, %27, %cst_20 [1] : vector<2x10xf32> to vector<2xf32>
      %29 = vector.shape_cast %28 : vector<2xf32> to vector<2x1xf32>
      %30 = math.log %29 : vector<2x1xf32>
      %31 = vector.broadcast %30 : vector<2x1xf32> to vector<2x10xf32>
      %32 = arith.subf %26, %31 : vector<2x10xf32>
      %c0_21 = arith.constant 0 : index
      %c0_22 = arith.constant 0 : index
      %33 = vector.load %arg7[%c0_21, %c0_22] : memref<2x10xf32, #tpu.memory_space<vmem>>, vector<2x10xf32>
      tpu.vector_store %arg7[%c0_21, %c0_22], %32 {strides = array<i32>} : memref<2x10xf32, #tpu.memory_space<vmem>>, vector<2x10xf32>,
    } else {
    }
    return
  }
  func.func @transform_0(%arg0: i32, %arg1: i32) -> (i32, i32) {
    %c0_i32 = arith.constant 0 : i32
    %c0_i32_0 = arith.constant 0 : i32
    return %arg0, %c0_i32 : i32, i32
  }
  func.func @transform_1(%arg0: i32, %arg1: i32) -> (i32, i32) {
    %c0_i32 = arith.constant 0 : i32
    %c0_i32_0 = arith.constant 0 : i32
    return %c0_i32, %arg1 : i32, i32
  }
  func.func @transform_2(%arg0: i32, %arg1: i32) -> (i32, i32) {
    %c0_i32 = arith.constant 0 : i32
    %c0_i32_0 = arith.constant 0 : i32
    return %c0_i32, %arg1 : i32, i32
  }
  func.func @transform_3(%arg0: i32, %arg1: i32) -> (i32, i32) {
    %c0_i32 = arith.constant 0 : i32
    %c0_i32_0 = arith.constant 0 : i32
    return %arg1, %c0_i32 : i32, i32
  }
  func.func @transform_4(%arg0: i32, %arg1: i32) -> (i32, i32) {
    %c0_i32 = arith.constant 0 : i32
    %c0_i32_0 = arith.constant 0 : i32
    %c0_i32_1 = arith.constant 0 : i32
    return %c0_i32, %c0_i32_0 : i32, i32
  }
  func.func @transform_5(%arg0: i32, %arg1: i32) -> (i32, i32) {
    %c0_i32 = arith.constant 0 : i32
    %c0_i32_0 = arith.constant 0 : i32
    return %arg0, %c0_i32 : i32, i32
  }
}

</mosaic_0001>

<bundles_post_ra>
// kernel: tpu_custom_call.1
= control target key start
LH: loop header
LB: loop body
LE: loop exit
PB: predicated region body
PF: predicated region fallthrough
CT: control target
= control target key end

     0   :  { %s6055_s0 = inlined_call_operand.hbm [shape: bf16[2,3200], index: 0, kind: input, shape index: {}]   ;;  %s6056_s1 = inlined_call_operand.hbm [shape: bf16[3200,1024], index: 1, kind: input, shape index: {}]   ;;  %s6057_s2 = inlined_call_operand.hbm [shape: f32[1,1024], index: 2, kind: input, shape index: {}]   ;;  %s6058_s3 = inlined_call_operand.vmem [shape: f32[1024,10], index: 3, kind: input, shape index: {}]   ;;  %s6059_s4 = inlined_call_operand.hbm [shape: f32[1,10], index: 4, kind: input, shape index: {}]   ;;  %s6060_s5 = inlined_call_operand.hbm [shape: f32[2,10], index: 5, kind: output, shape index: {}]  }
   0x1   :  { %6066 = sst [smem:[#allocation17_spill]] %s6056_s1 }
   0x2   :  { %10 = vsyncpa [#allocation4], 0 }
   0x3   :  { %11 = vsyncpa [#allocation7], 0 }
   0x4   :  { %13 = vsyncpa [#allocation7 + $0x1], 0 }
   0x5   :  { %14 = vsyncpa [#allocation10], 0 }
   0x6   :  { %15 = vsyncpa [#allocation5], 0  ;;  %s5240_s18 = smov 0   ;;  %s5242_s19 = smov 0  }
   0x7   :  { %s5244_s20 = smov 0   ;;  %s5246_s21 = smov 0  }
   0x8   :  { %s5248_s22 = smov 0   ;;  %s5250_s23 = smov 0  }
   0x9 LB: > { %s30_s24 = sadd.s32 1, %s5193_s22  ;;  %s66_s25 = sadd.s32 1, %s5185_s20  ;;  %s5197_s23 = sphi %s5250_s23, %s21_s23   ;;  %s5193_s22 = sphi %s5248_s22, %s6086_s22   ;;  %s5189_s21 = sphi %s5246_s21, %s6085_s21   ;;  %s5185_s20 = sphi %s5244_s20, %s6084_s20   ;;  %s5181_s19 = sphi %s5242_s19, %s6083_s19   ;;  %s5177_s18 = sphi %s5240_s18, %s6082_s18  }
   0xa   : > { %p31_p0 = scmp.ge.s32.totalorder %s30_s24, 4  ;;  %p73_p1 = scmp.ne.s32.totalorder %s5185_s20, %s5181_s19 }
   0xb   : > { %p74_p2 = scmp.eq.s32.totalorder %s5197_s23, 0  ;;  %p4322_p4 = scmp.lt.s32.totalorder %s5197_s23, 4 }
   0xc   : > { %s6088_s24 = smov (%p31_p0, %s30_s24), 0  ;;  %s227_s27 = sand.u32 1, %s5197_s23  }
   0xd   : > { %6067 = sst [smem:[#allocation16_spill]] %s6088_s24  ;;  %p75_p3 = por %p74_p2, %p73_p1 }
   0xe   : > { %s63_s26 = ssub.s32 %s5193_s22, %s6088_s24  ;;  %s229_s28 = sand.u32 1, %s5185_s20  }
   0xf   : > { %p64_p5 = scmp.eq.s32.totalorder %s63_s26, 0  ;;  %s4171_s29 = sshll.u32 %s5193_s22, 7 }
  0x10   : > { %s4288_s6 = smul.u32 3200, %s229_s28  ;;  %s6068_s1 = sld [smem:[#allocation17_spill]] }
  0x11   : > { %s5284_s30 = scalar_select %p64_p5, %s5185_s20, %s66_s25  }
  0x12   : > { %p5293_p6 = pnand %p4322_p4, %p75_p3  ;;  %s231_s11 = scalar_lea.vmem [#allocation6], %s4288_s6 }
  0x13   : > { %s238_s12 = sshll.u32 %s231_s11, 4  ;;  %s5299_s13 = scalar_lea.sflag [#allocation7], %s227_s27  ;;  %s5297_s12 = int_to_ptr.vmem [resolvable:$true] %s238_s12 }
  0x14   : > { %p6063_p8 = pneg %p5293_p6 }
  0x16   : > { %s5291_s9 = scalar_lea.hbm %s6068_s1, %s4171_s29  ;;  %s4998_s17 = scalar_lea.hbm %s6068_s1, 204800 }
  0x17   : > { %s4993_s14 = scalar_lea.hbm %s5291_s9, 51200  ;;  %p4999_p11 = scmp.lt.u32.totalorder %s5291_s9, %s6068_s1 }
  0x18   : > { %p4994_p7 = scmp.ne.s32.totalorder %s5291_s9, %s4993_s14  ;;  %p5000_p12 = scmp.lt.u32.totalorder %s4998_s17, %s4993_s14 }
  0x19   : > { %p5002_p0 = scmp.lt.u32.totalorder %s4993_s14, %s5291_s9 }
  0x1a   : > { %p4996_p9 = pnand %p6063_p8, %p4994_p7  ;;  %p5001_p13 = por %p5000_p12, %p4999_p11 }
  0x1c   : > { %p4997_p10 = pneg %p4996_p9  ;;  %p5003_p1 = por %p5002_p0, %p5001_p13 }
  0x1e   : > { %p5004_p2 = pnand %p5003_p1, %p4997_p10 }
  0x20   : > { %5007 = shalt.err (!%p5004_p2)
}
  0x21   : > { %s5008_s27 = scalar_lea.vmem %s5297_s12, 51200  ;;  %s5199_s29 = smov [#allocation6]  }
  0x22   : > { %p5009_p3 = scmp.ne.s32.totalorder %s5297_s12, %s5008_s27  ;;  %s5013_s6 = sshll.u32 %s5199_s29, 4  ;;  %s5014_s6 = int_to_ptr.vmem [resolvable:$false] %s5013_s6 }
  0x23   : > { %s5015_s7 = scalar_lea.vmem %s5014_s6, 102400  ;;  %p5016_p7 = scmp.lt.s32.totalorder %s5297_s12, %s5014_s6 }
  0x24   : > { %p5011_p4 = pnand %p5009_p3, %p6063_p8  ;;  %p5017_p9 = scmp.lt.s32.totalorder %s5015_s7, %s5008_s27 }
  0x26   : > { %p5012_p5 = pneg %p5011_p4  ;;  %p5018_p11 = por %p5017_p9, %p5016_p7 }
  0x28   : > { %p5019_p12 = pnand %p5018_p11, %p5012_p5 }
  0x2a   : > { %5022 = shalt.err (!%p5019_p12)
}
  0x2b   : > { %s5200_s8 = smov 512   ;;  %s5201_s11 = smov 128  }
  0x2c   : > { %s5202_s14 = smov 8   ;;  %s5328_s15 = sadd.s32 4294967295, %s5197_s23  }
  0x2d   : > { %4316 = dma.hbm_to_vmem [thread:$0]  (!%p5293_p6), %s5291_s9, 51200, %s5297_s12, %s5299_s13, %s5200_s8, %s5201_s11, %s5202_s14  }
  0x2e   : > { %p79_p10 = scmp.ne.s32.totalorder %s5181_s19, %s5177_s18  ;;  %p6062_p13 = scmp.eq.s32.totalorder %s5328_s15, 0 }
  0x2f   : > { %p3748_p0 = scmp.ge.s32.totalorder %s5197_s23, 1  ;;  %p189_p1 = scmp.lt.s32.totalorder %s5197_s23, 5 }
  0x30   : > { %p5337_p2 = por %p6062_p13, %p79_p10  ;;  %s5203_s9 = smov [#allocation3]  }
  0x31   : > { %p5341_p3 = pnand %p3748_p0, %p189_p1  ;;  %s205_s12 = sshll.u32 %s5203_s9, 4  ;;  %s5345_s12 = int_to_ptr.vmem [resolvable:$true] %s205_s12 }
  0x32   : > { %s6070_s16 = scalar_select %p5337_p2, 1, 0 }
  0x33   : > { %s6071_s17 = scalar_select %p5341_p3, 1, 0 }
  0x34   : > { %p4306_p4 = pneg %p5341_p3  ;;  %s5204_s18 = smov [#allocation9]  }
  0x35   : > { %s216_s25 = sshll.u32 %s5204_s18, 4  ;;  %s3754_s26 = sshll.u32 %s229_s28, 1  ;;  %s5349_s25 = int_to_ptr.vmem [resolvable:$true] %s216_s25 }
  0x36   : > { %p5355_p5 = pnand %p4306_p4, %p6062_p13  ;;  %s4172_s29 = sshll.u32 %s5193_s22, 5 }
  0x37   : > { %s252_s6 = scalar_lea.vmem [#allocation8], %s3754_s26  ;;  %s5365_s14 = scalar_lea.hbm %s6057_s2, %s4172_s29 }
  0x38   : > { %s5360_s7 = sshll.u32 %s252_s6, 4  ;;  %s5023_s28 = scalar_lea.hbm %s6055_s0, 400  ;;  %s261_s7 = int_to_ptr.vmem [resolvable:$true] %s5360_s7 }
  0x39   : > { %p5024_p7 = scmp.ne.s32.totalorder %s6055_s0, %s5023_s28  ;;  %p5025_p9 = pneg %p5355_p5 }
  0x3a   : > { %p5030_p10 = scmp.lt.u32.totalorder %s5023_s28, %s6055_s0 }
  0x3b   : > { %p5026_p11 = pnand %p5025_p9, %p5024_p7 }
  0x3d   : > { %p5027_p12 = pneg %p5026_p11 }
  0x3f   : > { %p5032_p0 = pnand %p5030_p10, %p5027_p12 }
  0x41   : > { %5035 = shalt.err (!%p5032_p0)
}
  0x42   : > { %s5036_s29 = scalar_lea.vmem %s5345_s12, 400  ;;  %s5043_s1 = scalar_lea.vmem %s5345_s12, 416 }
  0x43   : > { %p5037_p1 = scmp.ne.s32.totalorder %s5345_s12, %s5036_s29  ;;  %p5044_p7 = scmp.lt.s32.totalorder %s5345_s12, %s5345_s12 }
  0x44   : > { %p5045_p11 = scmp.lt.s32.totalorder %s5043_s1, %s5036_s29 }
  0x45   : > { %p5039_p4 = pnand %p5037_p1, %p5025_p9 }
  0x46   : > { %p5046_p8 = por %p5045_p11, %p5044_p7 }
  0x47   : > { %p5040_p13 = pneg %p5039_p4 }
  0x49   : > { %p5047_p2 = pnand %p5046_p8, %p5040_p13 }
  0x4b   : > { %5050 = shalt.err (!%p5047_p2)
}
  0x4c   : > { %4309 = dma.hbm_to_vmem [thread:$0]  (!%p5355_p5), %s6055_s0, 400, %s5345_s12, [#allocation4]  }
  0x4d   : > { %s5051_s18 = scalar_lea.hbm %s6059_s4, 16 }
  0x4e   : > { %p5052_p12 = scmp.ne.s32.totalorder %s6059_s4, %s5051_s18  ;;  %p5058_p2 = scmp.lt.u32.totalorder %s5051_s18, %s6059_s4 }
  0x50   : > { %p5054_p8 = pnand %p5052_p12, %p5025_p9 }
  0x52   : > { %p5055_p13 = pneg %p5054_p8 }
  0x54   : > { %p5060_p10 = pnand %p5058_p2, %p5055_p13 }
  0x56   : > { %5063 = shalt.err (!%p5060_p10)
}
  0x57   : > { %s5064_s12 = scalar_lea.vmem %s5349_s25, 16  ;;  %s5071_s1 = scalar_lea.vmem %s5349_s25, 32 }
  0x58   : > { %p5065_p0 = scmp.ne.s32.totalorder %s5349_s25, %s5064_s12  ;;  %p5072_p7 = scmp.lt.s32.totalorder %s5349_s25, %s5349_s25 }
  0x59   : > { %p5073_p11 = scmp.lt.s32.totalorder %s5071_s1, %s5064_s12 }
  0x5a   : > { %p5067_p1 = pnand %p5065_p0, %p5025_p9 }
  0x5b   : > { %p5074_p12 = por %p5073_p11, %p5072_p7 }
  0x5c   : > { %p5068_p4 = pneg %p5067_p1 }
  0x5e   : > { %p5075_p8 = pnand %p5074_p12, %p5068_p4 }
  0x60   : > { %5078 = shalt.err (!%p5075_p8)
}
  0x61   : > { %4312 = dma.hbm_to_vmem [thread:$0]  (!%p5355_p5), %s6059_s4, 16, %s5349_s25, [#allocation10]  }
  0x62   : > { %s5079_s11 = scalar_lea.hbm %s5365_s14, 32  ;;  %p6073_p13 = pneg %p5293_p6 }
  0x63   : > { %p5080_p9 = scmp.ne.s32.totalorder %s5365_s14, %s5079_s11  ;;  %s5084_s18 = scalar_lea.hbm %s6057_s2, 128 }
  0x64   : > { %p5085_p0 = scmp.lt.u32.totalorder %s5365_s14, %s6057_s2  ;;  %p5086_p1 = scmp.lt.u32.totalorder %s5084_s18, %s5079_s11 }
  0x65   : > { %p5082_p2 = pnand %p5080_p9, %p6073_p13  ;;  %p5088_p7 = scmp.lt.u32.totalorder %s5079_s11, %s5365_s14 }
  0x66   : > { %p5087_p4 = por %p5086_p1, %p5085_p0 }
  0x67   : > { %p5083_p10 = pneg %p5082_p2 }
  0x68   : > { %p5089_p11 = por %p5088_p7, %p5087_p4 }
  0x6a   : > { %p5090_p5 = pnand %p5089_p11, %p5083_p10 }
  0x6c   : > { %5093 = shalt.err (!%p5090_p5)
}
  0x6d   : > { %s5094_s25 = scalar_lea.vmem %s261_s7, 32  ;;  %p6074_p8 = pmov %p6073_p13 }
  0x6e   : > { %p5095_p12 = scmp.ne.s32.totalorder %s261_s7, %s5094_s25  ;;  %s5205_s6 = smov [#allocation8]  }
  0x6f   : > { %s5099_s29 = sshll.u32 %s5205_s6, 4  ;;  %s5100_s29 = int_to_ptr.vmem [resolvable:$false] %s5099_s29 }
  0x70   : > { %p5097_p9 = pnand %p5095_p12, %p6074_p8  ;;  %s5101_s12 = scalar_lea.vmem %s5100_s29, 64 }
  0x71   : > { %p5102_p2 = scmp.lt.s32.totalorder %s261_s7, %s5100_s29  ;;  %p5103_p3 = scmp.lt.s32.totalorder %s5101_s12, %s5094_s25 }
  0x72   : > { %p5098_p13 = pneg %p5097_p9 }
  0x73   : > { %p5104_p0 = por %p5103_p3, %p5102_p2 }
  0x75   : > { %p5105_p1 = pnand %p5104_p0, %p5098_p13 }
  0x77   : > { %5108 = shalt.err (!%p5105_p1)
}
  0x78   : > { %4319 = dma.hbm_to_vmem [thread:$0]  (!%p5293_p6), %s5365_s14, 32, %s261_s7, %s5299_s13  }
  0x79   : > { %p6075_p10 = scmp.ne.s32.totalorder %s6071_s17, 0 }
  0x7a   : > { %p6076_p4 = scmp.eq.s32.totalorder (!%p6075_p10), %s5328_s15, 0 }
  0x7b   : > { %278 = sbr.rel (%p6075_p10) target bundleno = 1353 (0x549), region = 40 }
  0x82   : > { %5160 = dma.done.wait (%p6076_p4), [#allocation4], 400   ;;  %p6077_p7 = pmov %p6076_p4 }
  0x83   : > { %s284_s1 = sand.u32 1, %s5328_s15   ;;  %s286_s24 = sand.u32 1, %s5181_s19  }
  0x84   : > { %5162 = vsyncadd (%p6077_p7), [#allocation4], 4294966896  ;;  %s4289_s8 = smul.u32 3200, %s286_s24  ;;  %s285_s11 = scalar_lea.sflag [#allocation7], %s284_s1 }
  0x85   : > { %p6078_p3 = scmp.ne.s32.totalorder %s6070_s16, 0 }
  0x86   : > { %s5450_s10 = scalar_lea.vmem [#allocation6], %s4289_s8 }
  0x87   : > { %5164 = dma.done.wait (%p6078_p3), %s285_s11, 51232  }
  0x88   : > { %5166 = vsyncadd (%p6078_p3), %s285_s11, 4294916064  ;;  %s5456_s13 = sshll.u32 %s286_s24, 1  ;;  %p6079_p6 = pmov %p6076_p4 }
  0x89   : > { %s297_s17 = scalar_lea.vmem [#allocation8], %s5456_s13 }
  0x8a   : > { %5168 = dma.done.wait (%p6079_p6), [#allocation10], 16   ;;  %p6080_p11 = pmov %p6076_p4 }
  0x8b   : > { %s3761_s7 = sshll.u32 %s5189_s21, 5  ;;  %p3763_p12 = scmp.ne.s32.totalorder %s5189_s21, 0 }
  0x8c   : > { %5170 = vsyncadd (%p6080_p11), [#allocation10], 4294967280  ;;  %p336_p5 = scmp.lt.s32.totalorder %s3761_s7, 127  ;;  %vm346_vm0 = vcmask (!%p3763_p12), 74752   ;;  %v5206_v0 = vmov (!%p3763_p12), 0.0  }
  0x8d   : > { %345 = sbr.rel (%p3763_p12) target bundleno = 148 (0x94), region = 60  ;;  %347 = vst.msk [vmem:[#allocation2] sm:$0x3] (!%p3763_p12), %vm346_vm0, %v5206_v0 }
  0x8e   : > { %s6090_s7 = smov (!%p336_p5, %s3761_s7), 127 }
  0x8f   : > { %s3762_s14 = sshll.u32 %s6090_s7, 3 }
  0x90   : > { %s5467_s16 = scalar_lea.vmem %s6058_s3, %s3762_s14 }
  0x94 PF: > { %v4384_v1 = vld [vmem:[%s5450_s10 + $0x4] ss:$8 sps:$4 sm:$0xff]   ;;  %v4388_v3 = vld [vmem:[%s5450_s10] ss:$8 sps:$4 sm:$0xff]   ;;  %v4390_v5 = vld [vmem:[%s5450_s10 + $0x14] ss:$8 sps:$4 sm:$0xff]   ;;  %v754_v37 = vlaneseq }
  0x95   : > { %v4386_v2 = vld [vmem:[%s5450_s10 + $0x604] ss:$8 sps:$4 sm:$0xff]   ;;  %2954 = vmatprep.subr.bf16.mxu1 %v4384_v1  ;;  %v4389_v4 = vld [vmem:[%s5450_s10 + $0x600] ss:$8 sps:$4 sm:$0xff]   ;;  %v4392_v6 = vld [vmem:[%s5450_s10 + $0x614] ss:$8 sps:$4 sm:$0xff]  }
  0x96   : > { %3200 = vmatprep.subr.bf16.mxu0 %v4386_v2  ;;  %2955 = vmatpush1.bf16.msra.mxu1 %v4388_v3  ;;  %v4394_v7 = vld [vmem:[%s5450_s10 + $0x10] ss:$8 sps:$4 sm:$0xff]   ;;  %v4396_v9 = vld [vmem:[%s5450_s10 + $0x24] ss:$8 sps:$4 sm:$0xff]   ;;  %v4400_v11 = vld [vmem:[%s5450_s10 + $0x20] ss:$8 sps:$4 sm:$0xff]  }
  0x97   : > { %3201 = vmatpush1.bf16.msra.mxu0 %v4389_v4  ;;  %2956 = vmatprep.subr.bf16.mxu1 %v4390_v5  ;;  %v4395_v8 = vld [vmem:[%s5450_s10 + $0x610] ss:$8 sps:$4 sm:$0xff]   ;;  %v4398_v10 = vld [vmem:[%s5450_s10 + $0x624] ss:$8 sps:$4 sm:$0xff]   ;;  %v4401_v12 = vld [vmem:[%s5450_s10 + $0x620] ss:$8 sps:$4 sm:$0xff]  }
  0x98   : > { %3202 = vmatprep.subr.bf16.mxu0 %v4392_v6  ;;  %v4402_v13 = vld [vmem:[%s5450_s10 + $0x34] ss:$8 sps:$4 sm:$0xff]   ;;  %v4406_v15 = vld [vmem:[%s5450_s10 + $0x30] ss:$8 sps:$4 sm:$0xff]   ;;  %v4408_v17 = vld [vmem:[%s5450_s10 + $0x44] ss:$8 sps:$4 sm:$0xff]  }
  0x99   : > { %v4404_v14 = vld [vmem:[%s5450_s10 + $0x634] ss:$8 sps:$4 sm:$0xff]   ;;  %v4407_v16 = vld [vmem:[%s5450_s10 + $0x630] ss:$8 sps:$4 sm:$0xff]   ;;  %v4410_v18 = vld [vmem:[%s5450_s10 + $0x644] ss:$8 sps:$4 sm:$0xff]  }
  0x9a   : > { %2957 = vmatpush1.bf16.msra.mxu1 %v4394_v7  ;;  %v4412_v19 = vld [vmem:[%s5450_s10 + $0x40] ss:$8 sps:$4 sm:$0xff]   ;;  %v4414_v21 = vld [vmem:[%s5450_s10 + $0x54] ss:$8 sps:$4 sm:$0xff]   ;;  %v4418_v23 = vld [vmem:[%s5450_s10 + $0x50] ss:$8 sps:$4 sm:$0xff]  }
  0x9b   : > { %3203 = vmatpush1.bf16.msra.mxu0 %v4395_v8  ;;  %2958 = vmatprep.subr.bf16.mxu1 %v4396_v9  ;;  %v4413_v20 = vld [vmem:[%s5450_s10 + $0x640] ss:$8 sps:$4 sm:$0xff]   ;;  %v4416_v22 = vld [vmem:[%s5450_s10 + $0x654] ss:$8 sps:$4 sm:$0xff]   ;;  %v4419_v24 = vld [vmem:[%s5450_s10 + $0x650] ss:$8 sps:$4 sm:$0xff]  }
  0x9c   : > { %3204 = vmatprep.subr.bf16.mxu0 %v4398_v10  ;;  %v4420_v25 = vld [vmem:[%s5450_s10 + $0x64] ss:$8 sps:$4 sm:$0xff]   ;;  %v4424_v27 = vld [vmem:[%s5450_s10 + $0x60] ss:$8 sps:$4 sm:$0xff]   ;;  %v4426_v29 = vld [vmem:[%s5450_s10 + $0x74] ss:$8 sps:$4 sm:$0xff]  }
  0x9d   : > { %v4422_v26 = vld [vmem:[%s5450_s10 + $0x664] ss:$8 sps:$4 sm:$0xff]   ;;  %v4425_v28 = vld [vmem:[%s5450_s10 + $0x660] ss:$8 sps:$4 sm:$0xff]   ;;  %v4428_v30 = vld [vmem:[%s5450_s10 + $0x674] ss:$8 sps:$4 sm:$0xff]  }
  0x9e   : > { %2959 = vmatpush1.bf16.msra.mxu1 %v4400_v11  ;;  %v4430_v31 = vld [vmem:[%s5450_s10 + $0x70] ss:$8 sps:$4 sm:$0xff]   ;;  %v4432_v33 = vld [vmem:[%s5450_s10 + $0x84] ss:$8 sps:$4 sm:$0xff]   ;;  %v4436_v35 = vld [vmem:[%s5450_s10 + $0x80] ss:$8 sps:$4 sm:$0xff]  }
  0x9f   : > { %3205 = vmatpush1.bf16.msra.mxu0 %v4401_v12  ;;  %2960 = vmatprep.subr.bf16.mxu1 %v4402_v13  ;;  %v4431_v32 = vld [vmem:[%s5450_s10 + $0x670] ss:$8 sps:$4 sm:$0xff]   ;;  %v4434_v34 = vld [vmem:[%s5450_s10 + $0x684] ss:$8 sps:$4 sm:$0xff]   ;;  %v4437_v36 = vld [vmem:[%s5450_s10 + $0x680] ss:$8 sps:$4 sm:$0xff]  }
  0xa0   : > { %3206 = vmatprep.subr.bf16.mxu0 %v4404_v14  ;;  %v5207_v38 = vmov 1966171168   ;;  %v4438_v40 = vld [vmem:[%s5450_s10 + $0x94] ss:$8 sps:$4 sm:$0xff]   ;;  %v4442_v42 = vld [vmem:[%s5450_s10 + $0x90] ss:$8 sps:$4 sm:$0xff]  }
  0xa1   : > { %v770_v39 = vunpack.c.l.s4 %v5207_v38  ;;  %v4440_v41 = vld [vmem:[%s5450_s10 + $0x694] ss:$8 sps:$4 sm:$0xff]   ;;  %v5509_v43 = vshrl.u32 %v754_v37, 7  ;;  %v4443_v45 = vld [vmem:[%s5450_s10 + $0x690] ss:$8 sps:$4 sm:$0xff]   ;;  %v5521_v53 = vld [vmem:[#allocation3] sm:$0xff] }
  0xa2   : > { %2961 = vmatpush1.bf16.msra.mxu1 %v4406_v15  ;;  %v4444_v46 = vld [vmem:[%s5450_s10 + $0xa4] ss:$8 sps:$4 sm:$0xff]   ;;  %v4448_v48 = vld [vmem:[%s5450_s10 + $0xa0] ss:$8 sps:$4 sm:$0xff]   ;;  %v4450_v51 = vld [vmem:[%s5450_s10 + $0xb4] ss:$8 sps:$4 sm:$0xff]  }
  0xa3   : > { %3207 = vmatpush1.bf16.msra.mxu0 %v4407_v16  ;;  %2962 = vmatprep.subr.bf16.mxu1 %v4408_v17  ;;  %v771_v44 = vunpack.c.0.s8 %v770_v39  ;;  %v4446_v47 = vld [vmem:[%s5450_s10 + $0x6a4] ss:$8 sps:$4 sm:$0xff]   ;;  %v4449_v49 = vld [vmem:[%s5450_s10 + $0x6a0] ss:$8 sps:$4 sm:$0xff]   ;;  %v4452_v52 = vld [vmem:[%s5450_s10 + $0x6b4] ss:$8 sps:$4 sm:$0xff]  }
  0xa4   : > { %3208 = vmatprep.subr.bf16.mxu0 %v4410_v18  ;;  %v4454_v54 = vld [vmem:[%s5450_s10 + $0xb0] ss:$8 sps:$4 sm:$0xff]   ;;  %v4456_v58 = vld [vmem:[%s5450_s10 + $0xc4] ss:$8 sps:$4 sm:$0xff]   ;;  %v4460_v0 = vld [vmem:[%s5450_s10 + $0xc0] ss:$8 sps:$4 sm:$0xff]  }
  0xa5   : > { %v5517_v50 = vsub.s32 %v771_v44, %v5509_v43  ;;  %v4455_v56 = vld [vmem:[%s5450_s10 + $0x6b0] ss:$8 sps:$4 sm:$0xff]   ;;  %v4458_v59 = vld [vmem:[%s5450_s10 + $0x6c4] ss:$8 sps:$4 sm:$0xff]   ;;  %v4461_v1 = vld [vmem:[%s5450_s10 + $0x6c0] ss:$8 sps:$4 sm:$0xff]  }
  0xa6   : > { %2963 = vmatpush1.bf16.msra.mxu1 %v4412_v19  ;;  %v349_v57 = vld [vmem:[#allocation3 + $0x8] sm:$0xff]  ;;  %v4472_v10 = vld [vmem:[%s5450_s10 + $0xe0] ss:$8 sps:$4 sm:$0xff]   ;;  %vm3593_vm1 = vcmask 74752   ;;  %p4165_p8 = scmp.ne.s32.totalorder %s5189_s21, 3 }
  0xa7   : > { %3209 = vmatpush1.bf16.msra.mxu0 %v4413_v20  ;;  %2964 = vmatprep.subr.bf16.mxu1 %v4414_v21  ;;  %v775_v55 = vrot.slane %v5521_v53, %v5517_v50  ;;  %v817_v61 = vcombine.high %v349_v57, %v349_v57  ;;  %v4462_v2 = vld [vmem:[%s5450_s10 + $0xd4] ss:$8 sps:$4 sm:$0xff]   ;;  %v4466_v6 = vld [vmem:[%s5450_s10 + $0xd0] ss:$8 sps:$4 sm:$0xff]   ;;  %v4468_v8 = vld [vmem:[%s5450_s10 + $0xe4] ss:$8 sps:$4 sm:$0xff]  }
  0xa8   : > { %3210 = vmatprep.subr.bf16.mxu0 %v4416_v22  ;;  %v4464_v3 = vld [vmem:[%s5450_s10 + $0x6d4] ss:$8 sps:$4 sm:$0xff]   ;;  %v4467_v7 = vld [vmem:[%s5450_s10 + $0x6d0] ss:$8 sps:$4 sm:$0xff]   ;;  %v4470_v9 = vld [vmem:[%s5450_s10 + $0x6e4] ss:$8 sps:$4 sm:$0xff]  }
  0xa9   : > { %v783_v60 = vcombine.high %v775_v55, %v775_v55  ;;  %v831_v63 = vrot.slane %v817_v61, %v5517_v50  ;;  %v4473_v11 = vld [vmem:[%s5450_s10 + $0x6e0] ss:$8 sps:$4 sm:$0xff]   ;;  %v4474_v12 = vld [vmem:[%s5450_s10 + $0xf4] ss:$8 sps:$4 sm:$0xff]   ;;  %v4478_v14 = vld [vmem:[%s5450_s10 + $0xf0] ss:$8 sps:$4 sm:$0xff]   ;;  %v5549_v18 = vrot.slane %v775_v55, %v5517_v50 }
  0xaa   : > { %2965 = vmatpush1.bf16.msra.mxu1 %v4418_v23  ;;  %v4476_v13 = vld [vmem:[%s5450_s10 + $0x6f4] ss:$8 sps:$4 sm:$0xff]   ;;  %v4479_v15 = vld [vmem:[%s5450_s10 + $0x6f0] ss:$8 sps:$4 sm:$0xff]   ;;  %v4483_v16 = vld [vmem:[%s5450_s10 + $0x104] ss:$8 sps:$4 sm:$0xff]  }
  0xab   : > { %3211 = vmatpush1.bf16.msra.mxu0 %v4419_v24  ;;  %2966 = vmatprep.subr.bf16.mxu1 %v4420_v25  ;;  %v805_v62 = vrot.slane %v783_v60, %v5517_v50  ;;  %v833_v4 = vcombine.high %v831_v63, %v831_v63  ;;  %v4487_v17 = vld [vmem:[%s5450_s10 + $0x704] ss:$8 sps:$4 sm:$0xff]   ;;  %v5552_v19 = vrot.slane %v831_v63, %v5517_v50  ;;  %v4481_v20 = vld [vmem:[%s5450_s10 + $0x100] ss:$8 sps:$4 sm:$0xff]   ;;  %v4490_v22 = vld [vmem:[%s5450_s10 + $0x114] ss:$8 sps:$4 sm:$0xff]  }
  0xac   : > { %3212 = vmatprep.subr.bf16.mxu0 %v4422_v26  ;;  %v4485_v21 = vld [vmem:[%s5450_s10 + $0x700] ss:$8 sps:$4 sm:$0xff]   ;;  %v4493_v23 = vld [vmem:[%s5450_s10 + $0x714] ss:$8 sps:$4 sm:$0xff]   ;;  %v4488_v26 = vld [vmem:[%s5450_s10 + $0x110] ss:$8 sps:$4 sm:$0xff]  }
  0xad   : > { %2986 = vmatprep.mubr.bf16.mxu1 %v805_v62  ;;  %v861_v5 = vrot.slane %v833_v4, %v5517_v50  ;;  %v815_v24 = vcombine.high %v805_v62, %v805_v62  ;;  %v4511_v37 = vld [vmem:[%s5450_s10 + $0x744] ss:$8 sps:$4 sm:$0xff]   ;;  %v4506_v38 = vld [vmem:[%s5450_s10 + $0x140] ss:$8 sps:$4 sm:$0xff]   ;;  %v4515_v44 = vld [vmem:[%s5450_s10 + $0x750] ss:$8 sps:$4 sm:$0xff]  }
  0xae   : > { %2967 = vmatpush1.bf16.msra.mxu1 %v4424_v27  ;;  %v4491_v27 = vld [vmem:[%s5450_s10 + $0x710] ss:$8 sps:$4 sm:$0xff]   ;;  %v4509_v39 = vld [vmem:[%s5450_s10 + $0x740] ss:$8 sps:$4 sm:$0xff]   ;;  %v4532_v55 = vld [vmem:[%s5450_s10 + $0x184] ss:$8 sps:$4 sm:$0xff]  }
  0xaf   : > { %3213 = vmatpush1.bf16.msra.mxu0 %v4425_v28  ;;  %2968 = vmatprep.subr.bf16.mxu1 %v4426_v29  ;;  %v865_v25 = vcombine.high %v861_v5, %v861_v5  ;;  %v4496_v28 = vld [vmem:[%s5450_s10 + $0x124] ss:$8 sps:$4 sm:$0xff]   ;;  %v4530_v57 = vld [vmem:[%s5450_s10 + $0x180] ss:$8 sps:$4 sm:$0xff]   ;;  %v4541_v60 = vld [vmem:[%s5450_s10 + $0x794] ss:$8 sps:$4 sm:$0xff]  }
  0xb0   : > { %3214 = vmatprep.subr.bf16.mxu0 %v4428_v30  ;;  %3232 = vmatprep.mubr.bf16.mxu0 %v861_v5  ;;  %v4499_v29 = vld [vmem:[%s5450_s10 + $0x724] ss:$8 sps:$4 sm:$0xff]   ;;  %v4494_v30 = vld [vmem:[%s5450_s10 + $0x120] ss:$8 sps:$4 sm:$0xff]   ;;  %v4536_v61 = vld [vmem:[%s5450_s10 + $0x190] ss:$8 sps:$4 sm:$0xff]  }
  0xb1   : > { %v4539_v62 = vld [vmem:[%s5450_s10 + $0x790] ss:$8 sps:$4 sm:$0xff]   ;;  %v4544_v63 = vld [vmem:[%s5450_s10 + $0x1a4] ss:$8 sps:$4 sm:$0xff]   ;;  %v4553_v4 = vld [vmem:[%s5450_s10 + $0x7b4] ss:$8 sps:$4 sm:$0xff]  }
  0xb2   : > { %2969 = vmatpush1.bf16.msra.mxu1 %v4430_v31  ;;  %v4497_v31 = vld [vmem:[%s5450_s10 + $0x720] ss:$8 sps:$4 sm:$0xff]   ;;  %v4548_v5 = vld [vmem:[%s5450_s10 + $0x1b0] ss:$8 sps:$4 sm:$0xff]  }
  0xb3   : > { %3215 = vmatpush1.bf16.msra.mxu0 %v4431_v32  ;;  %2970 = vmatprep.subr.bf16.mxu1 %v4432_v33  ;;  %v4502_v32 = vld [vmem:[%s5450_s10 + $0x134] ss:$8 sps:$4 sm:$0xff]  }
  0xb4   : > { %3216 = vmatprep.subr.bf16.mxu0 %v4434_v34  ;;  %v4505_v33 = vld [vmem:[%s5450_s10 + $0x734] ss:$8 sps:$4 sm:$0xff]   ;;  %v4500_v34 = vld [vmem:[%s5450_s10 + $0x130] ss:$8 sps:$4 sm:$0xff]  }
  0xb6   : > { %2971 = vmatpush1.bf16.msra.mxu1 %v4436_v35  ;;  %v4503_v35 = vld [vmem:[%s5450_s10 + $0x730] ss:$8 sps:$4 sm:$0xff]  }
  0xb7   : > { %3217 = vmatpush1.bf16.msra.mxu0 %v4437_v36  ;;  %2972 = vmatprep.subr.bf16.mxu1 %v4438_v40  ;;  %v4508_v36 = vld [vmem:[%s5450_s10 + $0x144] ss:$8 sps:$4 sm:$0xff]   ;;  %v4514_v40 = vld [vmem:[%s5450_s10 + $0x154] ss:$8 sps:$4 sm:$0xff]  }
  0xb8   : > { %3218 = vmatprep.subr.bf16.mxu0 %v4440_v41  ;;  %v4517_v41 = vld [vmem:[%s5450_s10 + $0x754] ss:$8 sps:$4 sm:$0xff]  }
  0xba   : > { %2973 = vmatpush1.bf16.msra.mxu1 %v4442_v42  ;;  %v4512_v42 = vld [vmem:[%s5450_s10 + $0x150] ss:$8 sps:$4 sm:$0xff]  }
  0xbb   : > { %3219 = vmatpush1.bf16.msra.mxu0 %v4443_v45  ;;  %2974 = vmatprep.subr.bf16.mxu1 %v4444_v46  ;;  %v4520_v45 = vld [vmem:[%s5450_s10 + $0x164] ss:$8 sps:$4 sm:$0xff]  }
  0xbc   : > { %3220 = vmatprep.subr.bf16.mxu0 %v4446_v47  ;;  %v4523_v46 = vld [vmem:[%s5450_s10 + $0x764] ss:$8 sps:$4 sm:$0xff]   ;;  %v4518_v47 = vld [vmem:[%s5450_s10 + $0x160] ss:$8 sps:$4 sm:$0xff]  }
  0xbe   : > { %2975 = vmatpush1.bf16.msra.mxu1 %v4448_v48  ;;  %v4521_v48 = vld [vmem:[%s5450_s10 + $0x760] ss:$8 sps:$4 sm:$0xff]  }
  0xbf   : > { %3221 = vmatpush1.bf16.msra.mxu0 %v4449_v49  ;;  %2976 = vmatprep.subr.bf16.mxu1 %v4450_v51  ;;  %v4526_v49 = vld [vmem:[%s5450_s10 + $0x174] ss:$8 sps:$4 sm:$0xff]  }
  0xc0   : > { %3222 = vmatprep.subr.bf16.mxu0 %v4452_v52  ;;  %v4529_v51 = vld [vmem:[%s5450_s10 + $0x774] ss:$8 sps:$4 sm:$0xff]   ;;  %v4524_v52 = vld [vmem:[%s5450_s10 + $0x170] ss:$8 sps:$4 sm:$0xff]  }
  0xc2   : > { %2977 = vmatpush1.bf16.msra.mxu1 %v4454_v54  ;;  %v4527_v54 = vld [vmem:[%s5450_s10 + $0x770] ss:$8 sps:$4 sm:$0xff]  }
  0xc3   : > { %3223 = vmatpush1.bf16.msra.mxu0 %v4455_v56  ;;  %2978 = vmatprep.subr.bf16.mxu1 %v4456_v58  ;;  %v4535_v56 = vld [vmem:[%s5450_s10 + $0x784] ss:$8 sps:$4 sm:$0xff]   ;;  %v4533_v58 = vld [vmem:[%s5450_s10 + $0x780] ss:$8 sps:$4 sm:$0xff]  }
  0xc4   : > { %3224 = vmatprep.subr.bf16.mxu0 %v4458_v59  ;;  %v4538_v59 = vld [vmem:[%s5450_s10 + $0x194] ss:$8 sps:$4 sm:$0xff]  }
  0xc6   : > { %2979 = vmatpush1.bf16.msra.mxu1 %v4460_v0  ;;  %v4547_v0 = vld [vmem:[%s5450_s10 + $0x7a4] ss:$8 sps:$4 sm:$0xff]  }
  0xc7   : > { %3225 = vmatpush1.bf16.msra.mxu0 %v4461_v1  ;;  %2980 = vmatprep.subr.bf16.mxu1 %v4462_v2  ;;  %v4542_v1 = vld [vmem:[%s5450_s10 + $0x1a0] ss:$8 sps:$4 sm:$0xff]  }
  0xc8   : > { %3226 = vmatprep.subr.bf16.mxu0 %v4464_v3  ;;  %v4545_v2 = vld [vmem:[%s5450_s10 + $0x7a0] ss:$8 sps:$4 sm:$0xff]   ;;  %v4550_v3 = vld [vmem:[%s5450_s10 + $0x1b4] ss:$8 sps:$4 sm:$0xff]  }
  0xca   : > { %2981 = vmatpush1.bf16.msra.mxu1 %v4466_v6  ;;  %v4551_v6 = vld [vmem:[%s5450_s10 + $0x7b0] ss:$8 sps:$4 sm:$0xff]  }
  0xcb   : > { %3227 = vmatpush1.bf16.msra.mxu0 %v4467_v7  ;;  %2982 = vmatprep.subr.bf16.mxu1 %v4468_v8  ;;  %v4556_v7 = vld [vmem:[%s5450_s10 + $0x1c4] ss:$8 sps:$4 sm:$0xff]  }
  0xcc   : > { %3228 = vmatprep.subr.bf16.mxu0 %v4470_v9  ;;  %v4559_v8 = vld [vmem:[%s5450_s10 + $0x7c4] ss:$8 sps:$4 sm:$0xff]   ;;  %v4554_v9 = vld [vmem:[%s5450_s10 + $0x1c0] ss:$8 sps:$4 sm:$0xff]  }
  0xce   : > { %2983 = vmatpush1.bf16.msra.mxu1 %v4472_v10  ;;  %v4557_v10 = vld [vmem:[%s5450_s10 + $0x7c0] ss:$8 sps:$4 sm:$0xff]  }
  0xcf   : > { %3229 = vmatpush1.bf16.msra.mxu0 %v4473_v11  ;;  %2984 = vmatprep.subr.bf16.mxu1 %v4474_v12  ;;  %v4562_v11 = vld [vmem:[%s5450_s10 + $0x1d4] ss:$8 sps:$4 sm:$0xff]  }
  0xd0   : > { %3230 = vmatprep.subr.bf16.mxu0 %v4476_v13  ;;  %v4565_v12 = vld [vmem:[%s5450_s10 + $0x7d4] ss:$8 sps:$4 sm:$0xff]   ;;  %v4560_v13 = vld [vmem:[%s5450_s10 + $0x1d0] ss:$8 sps:$4 sm:$0xff]  }
  0xd2   : > { %2985 = vmatpush1.bf16.msra.mxu1 %v4478_v14  ;;  %v4563_v14 = vld [vmem:[%s5450_s10 + $0x7d0] ss:$8 sps:$4 sm:$0xff]  }
  0xd3   : > { %3231 = vmatpush1.bf16.msra.mxu0 %v4479_v15  ;;  %2995 = vmatprep.subr.bf16.mxu1 %v4483_v16  ;;  %v4568_v15 = vld [vmem:[%s5450_s10 + $0x1e4] ss:$8 sps:$4 sm:$0xff]  }
  0xd4   : > { %3241 = vmatprep.subr.bf16.mxu0 %v4487_v17  ;;  %v4571_v16 = vld [vmem:[%s5450_s10 + $0x7e4] ss:$8 sps:$4 sm:$0xff]   ;;  %v768_v17 = vcombine.high %v5521_v53, %v5521_v53  ;;  %v4575_v53 = vld [vmem:[%s5450_s10 + $0x7f0] ss:$8 sps:$4 sm:$0xff]  }
  0xd5   : > { %2987 = vmatmul.mubr.bf16.vlgmr.msra.gmra.mrb[0].mxu1 %v5549_v18 }
  0xd6   : > { %3233 = vmatmul.mubr.bf16.vlgmr.msra.gmra.mrb[0].mxu0 %v5552_v19  ;;  %2996 = vmatpush1.bf16.msra.mxu1 %v4481_v20  ;;  %v4566_v20 = vld [vmem:[%s5450_s10 + $0x1e0] ss:$8 sps:$4 sm:$0xff]  }
  0xd7   : > { %3242 = vmatpush1.bf16.msra.mxu0 %v4485_v21  ;;  %2997 = vmatprep.subr.bf16.mxu1 %v4490_v22  ;;  %v4569_v21 = vld [vmem:[%s5450_s10 + $0x7e0] ss:$8 sps:$4 sm:$0xff]   ;;  %v4574_v22 = vld [vmem:[%s5450_s10 + $0x1f4] ss:$8 sps:$4 sm:$0xff]  }
  0xd8   : > { %3243 = vmatprep.subr.bf16.mxu0 %v4493_v23  ;;  %3027 = vmatprep.mubr.bf16.mxu1 %v815_v24  ;;  %v4577_v23 = vld [vmem:[%s5450_s10 + $0x7f4] ss:$8 sps:$4 sm:$0xff]   ;;  %v5619_v24 = vrot.slane %v768_v17, %v5517_v50  ;;  %v4644_v17 = vld [vmem:[%s5450_s10 + $0x2b0] ss:$8 sps:$4 sm:$0xff]  }
  0xd9   : > { %3273 = vmatprep.mubr.bf16.mxu0 %v865_v25  ;;  %v4572_v25 = vld [vmem:[%s5450_s10 + $0x1f0] ss:$8 sps:$4 sm:$0xff]  }
  0xda   : > { %2998 = vmatpush1.bf16.msra.mxu1 %v4488_v26  ;;  %v4580_v26 = vld [vmem:[%s5450_s10 + $0x204] ss:$8 sps:$4 sm:$0xff]  }
  0xdb   : > { %3244 = vmatpush1.bf16.msra.mxu0 %v4491_v27  ;;  %2999 = vmatprep.subr.bf16.mxu1 %v4496_v28  ;;  %v4583_v27 = vld [vmem:[%s5450_s10 + $0x804] ss:$8 sps:$4 sm:$0xff]   ;;  %v784_v28 = vcombine.high %v5619_v24, %v5619_v24 }
  0xdc   : > { %3245 = vmatprep.subr.bf16.mxu0 %v4499_v29  ;;  %v813_v29 = vcombine.high %v5549_v18, %v5549_v18  ;;  %v4584_v18 = vld [vmem:[%s5450_s10 + $0x210] ss:$8 sps:$4 sm:$0xff]  }
  0xde   : > { %3000 = vmatpush1.bf16.msra.mxu1 %v4494_v30  ;;  %v863_v30 = vcombine.high %v5552_v19, %v5552_v19 }
  0xdf   : > { %3246 = vmatpush1.bf16.msra.mxu0 %v4497_v31  ;;  %3001 = vmatprep.subr.bf16.mxu1 %v4502_v32  ;;  %v4578_v31 = vld [vmem:[%s5450_s10 + $0x200] ss:$8 sps:$4 sm:$0xff]  }
  0xe0   : > { %3247 = vmatprep.subr.bf16.mxu0 %v4505_v33  ;;  %v4581_v32 = vld [vmem:[%s5450_s10 + $0x800] ss:$8 sps:$4 sm:$0xff]   ;;  %v4586_v33 = vld [vmem:[%s5450_s10 + $0x214] ss:$8 sps:$4 sm:$0xff]  }
  0xe2   : > { %3002 = vmatpush1.bf16.msra.mxu1 %v4500_v34  ;;  %v4589_v34 = vld [vmem:[%s5450_s10 + $0x814] ss:$8 sps:$4 sm:$0xff]  }
  0xe3   : > { %3248 = vmatpush1.bf16.msra.mxu0 %v4503_v35  ;;  %3003 = vmatprep.subr.bf16.mxu1 %v4508_v36  ;;  %v5636_v35 = vrot.slane %v784_v28, %v5517_v50  ;;  %v5638_v36 = vld [vmem:[#allocation3 + $0x10] sm:$0xff] }
  0xe4   : > { %3249 = vmatprep.subr.bf16.mxu0 %v4511_v37  ;;  %v5643_v19 = vrot.slane %v5638_v36, %v5517_v50  ;;  %v4587_v37 = vld [vmem:[%s5450_s10 + $0x810] ss:$8 sps:$4 sm:$0xff]  }
  0xe5   : > { %v4659_v28 = vld [vmem:[%s5450_s10 + $0x8d0] ss:$8 sps:$4 sm:$0xff]  }
  0xe6   : > { %3004 = vmatpush1.bf16.msra.mxu1 %v4506_v38  ;;  %v4592_v38 = vld [vmem:[%s5450_s10 + $0x224] ss:$8 sps:$4 sm:$0xff]  }
  0xe7   : > { %3250 = vmatpush1.bf16.msra.mxu0 %v4509_v39  ;;  %3005 = vmatprep.subr.bf16.mxu1 %v4514_v40  ;;  %v4595_v39 = vld [vmem:[%s5450_s10 + $0x824] ss:$8 sps:$4 sm:$0xff]   ;;  %v881_v40 = vcombine.high %v5643_v19, %v5643_v19 }
  0xe8   : > { %3251 = vmatprep.subr.bf16.mxu0 %v4517_v41  ;;  %v4590_v41 = vld [vmem:[%s5450_s10 + $0x220] ss:$8 sps:$4 sm:$0xff]  }
  0xea   : > { %3006 = vmatpush1.bf16.msra.mxu1 %v4512_v42  ;;  %v5653_v42 = vrot.slane %v881_v40, %v5517_v50  ;;  %v4674_v40 = vld [vmem:[%s5450_s10 + $0x300] ss:$8 sps:$4 sm:$0xff]  }
  0xeb   : > { %3252 = vmatpush1.bf16.msra.mxu0 %v4515_v44  ;;  %3007 = vmatprep.subr.bf16.mxu1 %v4520_v45  ;;  %v4593_v44 = vld [vmem:[%s5450_s10 + $0x820] ss:$8 sps:$4 sm:$0xff]   ;;  %v4598_v45 = vld [vmem:[%s5450_s10 + $0x234] ss:$8 sps:$4 sm:$0xff]  }
  0xec   : > { %3253 = vmatprep.subr.bf16.mxu0 %v4523_v46  ;;  %v4601_v46 = vld [vmem:[%s5450_s10 + $0x834] ss:$8 sps:$4 sm:$0xff]  }
  0xee   : > { %3008 = vmatpush1.bf16.msra.mxu1 %v4518_v47  ;;  %v4596_v47 = vld [vmem:[%s5450_s10 + $0x230] ss:$8 sps:$4 sm:$0xff]  }
  0xef   : > { %3254 = vmatpush1.bf16.msra.mxu0 %v4521_v48  ;;  %3009 = vmatprep.subr.bf16.mxu1 %v4526_v49  ;;  %v4599_v48 = vld [vmem:[%s5450_s10 + $0x830] ss:$8 sps:$4 sm:$0xff]   ;;  %v4604_v49 = vld [vmem:[%s5450_s10 + $0x244] ss:$8 sps:$4 sm:$0xff]  }
  0xf0   : > { %3255 = vmatprep.subr.bf16.mxu0 %v4529_v51  ;;  %v4607_v51 = vld [vmem:[%s5450_s10 + $0x844] ss:$8 sps:$4 sm:$0xff]  }
  0xf2   : > { %3010 = vmatpush1.bf16.msra.mxu1 %v4524_v52  ;;  %v4602_v52 = vld [vmem:[%s5450_s10 + $0x240] ss:$8 sps:$4 sm:$0xff]  }
  0xf3   : > { %3256 = vmatpush1.bf16.msra.mxu0 %v4527_v54  ;;  %3011 = vmatprep.subr.bf16.mxu1 %v4532_v55  ;;  %v4605_v54 = vld [vmem:[%s5450_s10 + $0x840] ss:$8 sps:$4 sm:$0xff]   ;;  %v4610_v55 = vld [vmem:[%s5450_s10 + $0x254] ss:$8 sps:$4 sm:$0xff]  }
  0xf4   : > { %3257 = vmatprep.subr.bf16.mxu0 %v4535_v56  ;;  %v4613_v56 = vld [vmem:[%s5450_s10 + $0x854] ss:$8 sps:$4 sm:$0xff]  }
  0xf6   : > { %3012 = vmatpush1.bf16.msra.mxu1 %v4530_v57  ;;  %v4608_v57 = vld [vmem:[%s5450_s10 + $0x250] ss:$8 sps:$4 sm:$0xff]  }
  0xf7   : > { %3258 = vmatpush1.bf16.msra.mxu0 %v4533_v58  ;;  %3013 = vmatprep.subr.bf16.mxu1 %v4538_v59  ;;  %v4611_v58 = vld [vmem:[%s5450_s10 + $0x850] ss:$8 sps:$4 sm:$0xff]   ;;  %v4616_v59 = vld [vmem:[%s5450_s10 + $0x264] ss:$8 sps:$4 sm:$0xff]  }
  0xf8   : > { %3259 = vmatprep.subr.bf16.mxu0 %v4541_v60  ;;  %v4619_v60 = vld [vmem:[%s5450_s10 + $0x864] ss:$8 sps:$4 sm:$0xff]  }
  0xfa   : > { %3014 = vmatpush1.bf16.msra.mxu1 %v4536_v61  ;;  %v4614_v61 = vld [vmem:[%s5450_s10 + $0x260] ss:$8 sps:$4 sm:$0xff]  }
  0xfb   : > { %3260 = vmatpush1.bf16.msra.mxu0 %v4539_v62  ;;  %3015 = vmatprep.subr.bf16.mxu1 %v4544_v63  ;;  %v4617_v62 = vld [vmem:[%s5450_s10 + $0x860] ss:$8 sps:$4 sm:$0xff]   ;;  %v4622_v63 = vld [vmem:[%s5450_s10 + $0x274] ss:$8 sps:$4 sm:$0xff]  }
  0xfc   : > { %3261 = vmatprep.subr.bf16.mxu0 %v4547_v0  ;;  %v4625_v0 = vld [vmem:[%s5450_s10 + $0x874] ss:$8 sps:$4 sm:$0xff]  }
  0xfe   : > { %3016 = vmatpush1.bf16.msra.mxu1 %v4542_v1  ;;  %v4620_v1 = vld [vmem:[%s5450_s10 + $0x270] ss:$8 sps:$4 sm:$0xff]  }
  0xff   : > { %3262 = vmatpush1.bf16.msra.mxu0 %v4545_v2  ;;  %3017 = vmatprep.subr.bf16.mxu1 %v4550_v3  ;;  %v4623_v2 = vld [vmem:[%s5450_s10 + $0x870] ss:$8 sps:$4 sm:$0xff]   ;;  %v4628_v3 = vld [vmem:[%s5450_s10 + $0x284] ss:$8 sps:$4 sm:$0xff]  }
 0x100   : > { %3263 = vmatprep.subr.bf16.mxu0 %v4553_v4  ;;  %v4631_v4 = vld [vmem:[%s5450_s10 + $0x884] ss:$8 sps:$4 sm:$0xff]  }
 0x102   : > { %3018 = vmatpush1.bf16.msra.mxu1 %v4548_v5  ;;  %v4626_v5 = vld [vmem:[%s5450_s10 + $0x280] ss:$8 sps:$4 sm:$0xff]  }
 0x103   : > { %3264 = vmatpush1.bf16.msra.mxu0 %v4551_v6  ;;  %3019 = vmatprep.subr.bf16.mxu1 %v4556_v7  ;;  %v4629_v6 = vld [vmem:[%s5450_s10 + $0x880] ss:$8 sps:$4 sm:$0xff]   ;;  %v4634_v7 = vld [vmem:[%s5450_s10 + $0x294] ss:$8 sps:$4 sm:$0xff]  }
 0x104   : > { %3265 = vmatprep.subr.bf16.mxu0 %v4559_v8  ;;  %v4637_v8 = vld [vmem:[%s5450_s10 + $0x894] ss:$8 sps:$4 sm:$0xff]  }
 0x106   : > { %3020 = vmatpush1.bf16.msra.mxu1 %v4554_v9  ;;  %v4632_v9 = vld [vmem:[%s5450_s10 + $0x290] ss:$8 sps:$4 sm:$0xff]  }
 0x107   : > { %3266 = vmatpush1.bf16.msra.mxu0 %v4557_v10  ;;  %3021 = vmatprep.subr.bf16.mxu1 %v4562_v11  ;;  %v4635_v10 = vld [vmem:[%s5450_s10 + $0x890] ss:$8 sps:$4 sm:$0xff]   ;;  %v4640_v11 = vld [vmem:[%s5450_s10 + $0x2a4] ss:$8 sps:$4 sm:$0xff]  }
 0x108   : > { %3267 = vmatprep.subr.bf16.mxu0 %v4565_v12  ;;  %v4643_v12 = vld [vmem:[%s5450_s10 + $0x8a4] ss:$8 sps:$4 sm:$0xff]  }
 0x10a   : > { %3022 = vmatpush1.bf16.msra.mxu1 %v4560_v13  ;;  %v4638_v13 = vld [vmem:[%s5450_s10 + $0x2a0] ss:$8 sps:$4 sm:$0xff]  }
 0x10b   : > { %3268 = vmatpush1.bf16.msra.mxu0 %v4563_v14  ;;  %3023 = vmatprep.subr.bf16.mxu1 %v4568_v15  ;;  %v4641_v14 = vld [vmem:[%s5450_s10 + $0x8a0] ss:$8 sps:$4 sm:$0xff]   ;;  %v4646_v15 = vld [vmem:[%s5450_s10 + $0x2b4] ss:$8 sps:$4 sm:$0xff]  }
 0x10c   : > { %3269 = vmatprep.subr.bf16.mxu0 %v4571_v16  ;;  %v4649_v16 = vld [vmem:[%s5450_s10 + $0x8b4] ss:$8 sps:$4 sm:$0xff]  }
 0x10e   : > { %3024 = vmatpush1.bf16.msra.mxu1 %v4566_v20  ;;  %v4647_v20 = vld [vmem:[%s5450_s10 + $0x8b0] ss:$8 sps:$4 sm:$0xff]  }
 0x10f   : > { %3270 = vmatpush1.bf16.msra.mxu0 %v4569_v21  ;;  %3025 = vmatprep.subr.bf16.mxu1 %v4574_v22  ;;  %v4652_v21 = vld [vmem:[%s5450_s10 + $0x2c4] ss:$8 sps:$4 sm:$0xff]  }
 0x110   : > { %3271 = vmatprep.subr.bf16.mxu0 %v4577_v23  ;;  %v4655_v22 = vld [vmem:[%s5450_s10 + $0x8c4] ss:$8 sps:$4 sm:$0xff]   ;;  %v4650_v23 = vld [vmem:[%s5450_s10 + $0x2c0] ss:$8 sps:$4 sm:$0xff]  }
 0x112   : > { %3026 = vmatpush1.bf16.msra.mxu1 %v4572_v25  ;;  %v4653_v25 = vld [vmem:[%s5450_s10 + $0x8c0] ss:$8 sps:$4 sm:$0xff]  }
 0x113   : > { %3272 = vmatpush1.bf16.msra.mxu0 %v4575_v53  ;;  %3036 = vmatprep.subr.bf16.mxu1 %v4580_v26  ;;  %v4658_v53 = vld [vmem:[%s5450_s10 + $0x2d4] ss:$8 sps:$4 sm:$0xff]  }
 0x114   : > { %3282 = vmatprep.subr.bf16.mxu0 %v4583_v27  ;;  %v4661_v26 = vld [vmem:[%s5450_s10 + $0x8d4] ss:$8 sps:$4 sm:$0xff]   ;;  %v4656_v27 = vld [vmem:[%s5450_s10 + $0x2d0] ss:$8 sps:$4 sm:$0xff]  }
 0x115   : > { %3028 = vmatmul.mubr.bf16.vlgmr.msra.gmra.mrb[0].mxu1 %v813_v29  ;;  %v4664_v29 = vld [vmem:[%s5450_s10 + $0x2e4] ss:$8 sps:$4 sm:$0xff]  }
 0x116   : > { %3274 = vmatmul.mubr.bf16.vlgmr.msra.gmra.mrb[0].mxu0 %v863_v30  ;;  %3037 = vmatpush1.bf16.msra.mxu1 %v4578_v31  ;;  %v4667_v30 = vld [vmem:[%s5450_s10 + $0x8e4] ss:$8 sps:$4 sm:$0xff]   ;;  %v4662_v31 = vld [vmem:[%s5450_s10 + $0x2e0] ss:$8 sps:$4 sm:$0xff]  }
 0x117   : > { %3283 = vmatpush1.bf16.msra.mxu0 %v4581_v32  ;;  %3038 = vmatprep.subr.bf16.mxu1 %v4586_v33  ;;  %v4665_v32 = vld [vmem:[%s5450_s10 + $0x8e0] ss:$8 sps:$4 sm:$0xff]   ;;  %v4670_v33 = vld [vmem:[%s5450_s10 + $0x2f4] ss:$8 sps:$4 sm:$0xff]  }
 0x118   : > { %3284 = vmatprep.subr.bf16.mxu0 %v4589_v34  ;;  %3068 = vmatprep.mubr.bf16.mxu1 %v5636_v35  ;;  %v4673_v34 = vld [vmem:[%s5450_s10 + $0x8f4] ss:$8 sps:$4 sm:$0xff]  }
 0x119   : > { %3314 = vmatprep.mubr.bf16.mxu0 %v5653_v42 }
 0x11a   : > { %3039 = vmatpush1.bf16.msra.mxu1 %v4584_v18  ;;  %v4668_v18 = vld [vmem:[%s5450_s10 + $0x2f0] ss:$8 sps:$4 sm:$0xff]  }
 0x11b   : > { %3285 = vmatpush1.bf16.msra.mxu0 %v4587_v37  ;;  %3040 = vmatprep.subr.bf16.mxu1 %v4592_v38  ;;  %v4671_v37 = vld [vmem:[%s5450_s10 + $0x8f0] ss:$8 sps:$4 sm:$0xff]   ;;  %v4676_v38 = vld [vmem:[%s5450_s10 + $0x304] ss:$8 sps:$4 sm:$0xff]  }
 0x11c   : > { %3286 = vmatprep.subr.bf16.mxu0 %v4595_v39  ;;  %v4679_v39 = vld [vmem:[%s5450_s10 + $0x904] ss:$8 sps:$4 sm:$0xff]  }
 0x11e   : > { %3041 = vmatpush1.bf16.msra.mxu1 %v4590_v41  ;;  %v5714_v41 = vrot.slane %v5619_v24, %v5517_v50  ;;  %v913_v24 = vcombine.high %v5653_v42, %v5653_v42  ;;  %v4686_v42 = vld [vmem:[%s5450_s10 + $0x320] ss:$8 sps:$4 sm:$0xff]  }
 0x11f   : > { %3287 = vmatpush1.bf16.msra.mxu0 %v4593_v44  ;;  %3042 = vmatprep.subr.bf16.mxu1 %v4598_v45  ;;  %v5718_v44 = vrot.slane %v5643_v19, %v5517_v50  ;;  %v4677_v45 = vld [vmem:[%s5450_s10 + $0x900] ss:$8 sps:$4 sm:$0xff]   ;;  %v4680_v19 = vld [vmem:[%s5450_s10 + $0x310] ss:$8 sps:$4 sm:$0xff]  }
 0x120   : > { %3288 = vmatprep.subr.bf16.mxu0 %v4601_v46  ;;  %v4682_v46 = vld [vmem:[%s5450_s10 + $0x314] ss:$8 sps:$4 sm:$0xff]  }
 0x122   : > { %3043 = vmatpush1.bf16.msra.mxu1 %v4596_v47  ;;  %v4685_v47 = vld [vmem:[%s5450_s10 + $0x914] ss:$8 sps:$4 sm:$0xff]  }
 0x123   : > { %3289 = vmatpush1.bf16.msra.mxu0 %v4599_v48  ;;  %3044 = vmatprep.subr.bf16.mxu1 %v4604_v49  ;;  %v816_v48 = vcombine.high %v5636_v35, %v5636_v35  ;;  %v4683_v49 = vld [vmem:[%s5450_s10 + $0x910] ss:$8 sps:$4 sm:$0xff]   ;;  %v4691_v35 = vld [vmem:[%s5450_s10 + $0x924] ss:$8 sps:$4 sm:$0xff]  }
 0x124   : > { %3290 = vmatprep.subr.bf16.mxu0 %v4607_v51  ;;  %v4688_v51 = vld [vmem:[%s5450_s10 + $0x324] ss:$8 sps:$4 sm:$0xff]  }
 0x126   : > { %3045 = vmatpush1.bf16.msra.mxu1 %v4602_v52  ;;  %v4689_v52 = vld [vmem:[%s5450_s10 + $0x920] ss:$8 sps:$4 sm:$0xff]  }
 0x127   : > { %3291 = vmatpush1.bf16.msra.mxu0 %v4605_v54  ;;  %3046 = vmatprep.subr.bf16.mxu1 %v4610_v55  ;;  %v4694_v54 = vld [vmem:[%s5450_s10 + $0x334] ss:$8 sps:$4 sm:$0xff]  }
 0x128   : > { %3292 = vmatprep.subr.bf16.mxu0 %v4613_v56  ;;  %v4697_v55 = vld [vmem:[%s5450_s10 + $0x934] ss:$8 sps:$4 sm:$0xff]   ;;  %v4692_v56 = vld [vmem:[%s5450_s10 + $0x330] ss:$8 sps:$4 sm:$0xff]  }
 0x12a   : > { %3047 = vmatpush1.bf16.msra.mxu1 %v4608_v57  ;;  %v4695_v57 = vld [vmem:[%s5450_s10 + $0x930] ss:$8 sps:$4 sm:$0xff]  }
 0x12b   : > { %3293 = vmatpush1.bf16.msra.mxu0 %v4611_v58  ;;  %3048 = vmatprep.subr.bf16.mxu1 %v4616_v59  ;;  %v4700_v58 = vld [vmem:[%s5450_s10 + $0x344] ss:$8 sps:$4 sm:$0xff]  }
 0x12c   : > { %3294 = vmatprep.subr.bf16.mxu0 %v4619_v60  ;;  %v4703_v59 = vld [vmem:[%s5450_s10 + $0x944] ss:$8 sps:$4 sm:$0xff]   ;;  %v4698_v60 = vld [vmem:[%s5450_s10 + $0x340] ss:$8 sps:$4 sm:$0xff]  }
 0x12e   : > { %3049 = vmatpush1.bf16.msra.mxu1 %v4614_v61  ;;  %v4701_v61 = vld [vmem:[%s5450_s10 + $0x940] ss:$8 sps:$4 sm:$0xff]  }
 0x12f   : > { %3295 = vmatpush1.bf16.msra.mxu0 %v4617_v62  ;;  %3050 = vmatprep.subr.bf16.mxu1 %v4622_v63  ;;  %v4706_v62 = vld [vmem:[%s5450_s10 + $0x354] ss:$8 sps:$4 sm:$0xff]  }
 0x130   : > { %3296 = vmatprep.subr.bf16.mxu0 %v4625_v0  ;;  %v4709_v63 = vld [vmem:[%s5450_s10 + $0x954] ss:$8 sps:$4 sm:$0xff]   ;;  %v4704_v0 = vld [vmem:[%s5450_s10 + $0x350] ss:$8 sps:$4 sm:$0xff]  }
 0x132   : > { %3051 = vmatpush1.bf16.msra.mxu1 %v4620_v1  ;;  %v4707_v1 = vld [vmem:[%s5450_s10 + $0x950] ss:$8 sps:$4 sm:$0xff]  }
 0x133   : > { %3297 = vmatpush1.bf16.msra.mxu0 %v4623_v2  ;;  %3052 = vmatprep.subr.bf16.mxu1 %v4628_v3  ;;  %v4712_v2 = vld [vmem:[%s5450_s10 + $0x364] ss:$8 sps:$4 sm:$0xff]  }
 0x134   : > { %3298 = vmatprep.subr.bf16.mxu0 %v4631_v4  ;;  %v4715_v3 = vld [vmem:[%s5450_s10 + $0x964] ss:$8 sps:$4 sm:$0xff]   ;;  %v4710_v4 = vld [vmem:[%s5450_s10 + $0x360] ss:$8 sps:$4 sm:$0xff]  }
 0x136   : > { %3053 = vmatpush1.bf16.msra.mxu1 %v4626_v5  ;;  %v4713_v5 = vld [vmem:[%s5450_s10 + $0x960] ss:$8 sps:$4 sm:$0xff]  }
 0x137   : > { %3299 = vmatpush1.bf16.msra.mxu0 %v4629_v6  ;;  %3054 = vmatprep.subr.bf16.mxu1 %v4634_v7  ;;  %v4718_v6 = vld [vmem:[%s5450_s10 + $0x374] ss:$8 sps:$4 sm:$0xff]  }
 0x138   : > { %3300 = vmatprep.subr.bf16.mxu0 %v4637_v8  ;;  %v4721_v7 = vld [vmem:[%s5450_s10 + $0x974] ss:$8 sps:$4 sm:$0xff]   ;;  %v4716_v8 = vld [vmem:[%s5450_s10 + $0x370] ss:$8 sps:$4 sm:$0xff]  }
 0x13a   : > { %3055 = vmatpush1.bf16.msra.mxu1 %v4632_v9  ;;  %v4719_v9 = vld [vmem:[%s5450_s10 + $0x970] ss:$8 sps:$4 sm:$0xff]  }
 0x13b   : > { %3301 = vmatpush1.bf16.msra.mxu0 %v4635_v10  ;;  %3056 = vmatprep.subr.bf16.mxu1 %v4640_v11  ;;  %v4724_v10 = vld [vmem:[%s5450_s10 + $0x384] ss:$8 sps:$4 sm:$0xff]  }
 0x13c   : > { %3302 = vmatprep.subr.bf16.mxu0 %v4643_v12  ;;  %v4727_v11 = vld [vmem:[%s5450_s10 + $0x984] ss:$8 sps:$4 sm:$0xff]   ;;  %v4722_v12 = vld [vmem:[%s5450_s10 + $0x380] ss:$8 sps:$4 sm:$0xff]  }
 0x13e   : > { %3057 = vmatpush1.bf16.msra.mxu1 %v4638_v13  ;;  %v4725_v13 = vld [vmem:[%s5450_s10 + $0x980] ss:$8 sps:$4 sm:$0xff]  }
 0x13f   : > { %3303 = vmatpush1.bf16.msra.mxu0 %v4641_v14  ;;  %3058 = vmatprep.subr.bf16.mxu1 %v4646_v15  ;;  %v4730_v14 = vld [vmem:[%s5450_s10 + $0x394] ss:$8 sps:$4 sm:$0xff]  }
 0x140   : > { %3304 = vmatprep.subr.bf16.mxu0 %v4649_v16  ;;  %v4733_v15 = vld [vmem:[%s5450_s10 + $0x994] ss:$8 sps:$4 sm:$0xff]   ;;  %v4728_v16 = vld [vmem:[%s5450_s10 + $0x390] ss:$8 sps:$4 sm:$0xff]  }
 0x142   : > { %3059 = vmatpush1.bf16.msra.mxu1 %v4644_v17  ;;  %v4731_v17 = vld [vmem:[%s5450_s10 + $0x990] ss:$8 sps:$4 sm:$0xff]  }
 0x143   : > { %3305 = vmatpush1.bf16.msra.mxu0 %v4647_v20  ;;  %3060 = vmatprep.subr.bf16.mxu1 %v4652_v21  ;;  %v4736_v20 = vld [vmem:[%s5450_s10 + $0x3a4] ss:$8 sps:$4 sm:$0xff]  }
 0x144   : > { %3306 = vmatprep.subr.bf16.mxu0 %v4655_v22  ;;  %v4739_v21 = vld [vmem:[%s5450_s10 + $0x9a4] ss:$8 sps:$4 sm:$0xff]   ;;  %v4734_v22 = vld [vmem:[%s5450_s10 + $0x3a0] ss:$8 sps:$4 sm:$0xff]  }
 0x146   : > { %3061 = vmatpush1.bf16.msra.mxu1 %v4650_v23  ;;  %v4737_v23 = vld [vmem:[%s5450_s10 + $0x9a0] ss:$8 sps:$4 sm:$0xff]  }
 0x147   : > { %3307 = vmatpush1.bf16.msra.mxu0 %v4653_v25  ;;  %3062 = vmatprep.subr.bf16.mxu1 %v4658_v53  ;;  %v4742_v25 = vld [vmem:[%s5450_s10 + $0x3b4] ss:$8 sps:$4 sm:$0xff]  }
 0x148   : > { %3308 = vmatprep.subr.bf16.mxu0 %v4661_v26  ;;  %v4745_v53 = vld [vmem:[%s5450_s10 + $0x9b4] ss:$8 sps:$4 sm:$0xff]   ;;  %v4740_v26 = vld [vmem:[%s5450_s10 + $0x3b0] ss:$8 sps:$4 sm:$0xff]  }
 0x14a   : > { %3063 = vmatpush1.bf16.msra.mxu1 %v4656_v27  ;;  %v4743_v27 = vld [vmem:[%s5450_s10 + $0x9b0] ss:$8 sps:$4 sm:$0xff]  }
 0x14b   : > { %3309 = vmatpush1.bf16.msra.mxu0 %v4659_v28  ;;  %3064 = vmatprep.subr.bf16.mxu1 %v4664_v29  ;;  %v4748_v28 = vld [vmem:[%s5450_s10 + $0x3c4] ss:$8 sps:$4 sm:$0xff]  }
 0x14c   : > { %3310 = vmatprep.subr.bf16.mxu0 %v4667_v30  ;;  %v4751_v29 = vld [vmem:[%s5450_s10 + $0x9c4] ss:$8 sps:$4 sm:$0xff]   ;;  %v4746_v30 = vld [vmem:[%s5450_s10 + $0x3c0] ss:$8 sps:$4 sm:$0xff]  }
 0x14e   : > { %3065 = vmatpush1.bf16.msra.mxu1 %v4662_v31  ;;  %v4749_v31 = vld [vmem:[%s5450_s10 + $0x9c0] ss:$8 sps:$4 sm:$0xff]  }
 0x14f   : > { %3311 = vmatpush1.bf16.msra.mxu0 %v4665_v32  ;;  %3066 = vmatprep.subr.bf16.mxu1 %v4670_v33  ;;  %v4754_v32 = vld [vmem:[%s5450_s10 + $0x3d4] ss:$8 sps:$4 sm:$0xff]  }
 0x150   : > { %3312 = vmatprep.subr.bf16.mxu0 %v4673_v34  ;;  %v4757_v33 = vld [vmem:[%s5450_s10 + $0x9d4] ss:$8 sps:$4 sm:$0xff]   ;;  %v4752_v34 = vld [vmem:[%s5450_s10 + $0x3d0] ss:$8 sps:$4 sm:$0xff]  }
 0x152   : > { %3067 = vmatpush1.bf16.msra.mxu1 %v4668_v18  ;;  %v4755_v18 = vld [vmem:[%s5450_s10 + $0x9d0] ss:$8 sps:$4 sm:$0xff]  }
 0x153   : > { %3313 = vmatpush1.bf16.msra.mxu0 %v4671_v37  ;;  %3077 = vmatprep.subr.bf16.mxu1 %v4676_v38  ;;  %v4760_v37 = vld [vmem:[%s5450_s10 + $0x3e4] ss:$8 sps:$4 sm:$0xff]  }
 0x154   : > { %3323 = vmatprep.subr.bf16.mxu0 %v4679_v39  ;;  %v4763_v38 = vld [vmem:[%s5450_s10 + $0x9e4] ss:$8 sps:$4 sm:$0xff]   ;;  %v866_v39 = vcombine.high %v5638_v36, %v5638_v36  ;;  %v4767_v36 = vld [vmem:[%s5450_s10 + $0x9f0] ss:$8 sps:$4 sm:$0xff]  }
 0x155   : > { %3069 = vmatmul.mubr.bf16.vlgmr.msra.gmra.mrb[0].mxu1 %v5714_v41 }
 0x156   : > { %3315 = vmatmul.mubr.bf16.vlgmr.msra.gmra.mrb[0].mxu0 %v5718_v44  ;;  %3078 = vmatpush1.bf16.msra.mxu1 %v4674_v40  ;;  %v4758_v40 = vld [vmem:[%s5450_s10 + $0x3e0] ss:$8 sps:$4 sm:$0xff]  }
 0x157   : > { %3324 = vmatpush1.bf16.msra.mxu0 %v4677_v45  ;;  %3079 = vmatprep.subr.bf16.mxu1 %v4682_v46  ;;  %v4761_v45 = vld [vmem:[%s5450_s10 + $0x9e0] ss:$8 sps:$4 sm:$0xff]   ;;  %v4766_v46 = vld [vmem:[%s5450_s10 + $0x3f4] ss:$8 sps:$4 sm:$0xff]  }
 0x158   : > { %3325 = vmatprep.subr.bf16.mxu0 %v4685_v47  ;;  %3109 = vmatprep.mubr.bf16.mxu1 %v816_v48  ;;  %v4769_v47 = vld [vmem:[%s5450_s10 + $0x9f4] ss:$8 sps:$4 sm:$0xff]  }
 0x159   : > { %3355 = vmatprep.mubr.bf16.mxu0 %v913_v24  ;;  %v5787_v48 = vld.sshfl [vmem:[#allocation3 + $0x8] sm:$0xff pattern:$0x75316420]  ;;  %v5790_v24 = vrot.slane %v866_v39, %v5517_v50 }
 0x15a   : > { %3080 = vmatpush1.bf16.msra.mxu1 %v4680_v19  ;;  %v4764_v19 = vld [vmem:[%s5450_s10 + $0x3f0] ss:$8 sps:$4 sm:$0xff]  }
 0x15b   : > { %3326 = vmatpush1.bf16.msra.mxu0 %v4683_v49  ;;  %3081 = vmatprep.subr.bf16.mxu1 %v4688_v51  ;;  %v4772_v49 = vld [vmem:[%s5450_s10 + $0x404] ss:$8 sps:$4 sm:$0xff]   ;;  %v4839_v39 = vld [vmem:[%s5450_s10 + $0xab0] ss:$8 sps:$4 sm:$0xff]  }
 0x15c   : > { %3327 = vmatprep.subr.bf16.mxu0 %v4691_v35  ;;  %v4775_v51 = vld [vmem:[%s5450_s10 + $0xa04] ss:$8 sps:$4 sm:$0xff]   ;;  %v832_v35 = vcombine.high %v5787_v48, %v5787_v48 }
 0x15e   : > { %3082 = vmatpush1.bf16.msra.mxu1 %v4686_v42  ;;  %v882_v42 = vcombine.high %v5790_v24, %v5790_v24 }
 0x15f   : > { %3328 = vmatpush1.bf16.msra.mxu0 %v4689_v52  ;;  %3083 = vmatprep.subr.bf16.mxu1 %v4694_v54  ;;  %v4770_v52 = vld [vmem:[%s5450_s10 + $0x400] ss:$8 sps:$4 sm:$0xff]   ;;  %v814_v54 = vcombine.high %v5714_v41, %v5714_v41 }
 0x160   : > { %3329 = vmatprep.subr.bf16.mxu0 %v4697_v55  ;;  %v911_v55 = vcombine.high %v5718_v44, %v5718_v44  ;;  %v5814_v41 = vrot.slane %v882_v42, %v5517_v50  ;;  %v4784_v44 = vld [vmem:[%s5450_s10 + $0x424] ss:$8 sps:$4 sm:$0xff]  }
 0x161   : > { %v4859_v42 = vld [vmem:[%s5450_s10 + $0xae4] ss:$8 sps:$4 sm:$0xff]  }
 0x162   : > { %3084 = vmatpush1.bf16.msra.mxu1 %v4692_v56  ;;  %v4773_v56 = vld [vmem:[%s5450_s10 + $0xa00] ss:$8 sps:$4 sm:$0xff]  }
 0x163   : > { %3330 = vmatpush1.bf16.msra.mxu0 %v4695_v57  ;;  %3085 = vmatprep.subr.bf16.mxu1 %v4700_v58  ;;  %v4778_v57 = vld [vmem:[%s5450_s10 + $0x414] ss:$8 sps:$4 sm:$0xff]  }
 0x164   : > { %3331 = vmatprep.subr.bf16.mxu0 %v4703_v59  ;;  %v4781_v58 = vld [vmem:[%s5450_s10 + $0xa14] ss:$8 sps:$4 sm:$0xff]   ;;  %v4776_v59 = vld [vmem:[%s5450_s10 + $0x410] ss:$8 sps:$4 sm:$0xff]  }
 0x166   : > { %3086 = vmatpush1.bf16.msra.mxu1 %v4698_v60  ;;  %v4779_v60 = vld [vmem:[%s5450_s10 + $0xa10] ss:$8 sps:$4 sm:$0xff]  }
 0x167   : > { %3332 = vmatpush1.bf16.msra.mxu0 %v4701_v61  ;;  %3087 = vmatprep.subr.bf16.mxu1 %v4706_v62  ;;  %v5811_v61 = vrot.slane %v832_v35, %v5517_v50  ;;  %v4787_v62 = vld [vmem:[%s5450_s10 + $0xa24] ss:$8 sps:$4 sm:$0xff]  }
 0x168   : > { %3333 = vmatprep.subr.bf16.mxu0 %v4709_v63  ;;  %v4782_v63 = vld [vmem:[%s5450_s10 + $0x420] ss:$8 sps:$4 sm:$0xff]   ;;  %v4856_v35 = vld [vmem:[%s5450_s10 + $0x4e4] ss:$8 sps:$4 sm:$0xff]  }
 0x16a   : > { %3088 = vmatpush1.bf16.msra.mxu1 %v4704_v0  ;;  %v4785_v0 = vld [vmem:[%s5450_s10 + $0xa20] ss:$8 sps:$4 sm:$0xff]  }
 0x16b   : > { %3334 = vmatpush1.bf16.msra.mxu0 %v4707_v1  ;;  %3089 = vmatprep.subr.bf16.mxu1 %v4712_v2  ;;  %v4790_v1 = vld [vmem:[%s5450_s10 + $0x434] ss:$8 sps:$4 sm:$0xff]  }
 0x16c   : > { %3335 = vmatprep.subr.bf16.mxu0 %v4715_v3  ;;  %v4793_v2 = vld [vmem:[%s5450_s10 + $0xa34] ss:$8 sps:$4 sm:$0xff]   ;;  %v4788_v3 = vld [vmem:[%s5450_s10 + $0x430] ss:$8 sps:$4 sm:$0xff]  }
 0x16e   : > { %3090 = vmatpush1.bf16.msra.mxu1 %v4710_v4  ;;  %v4791_v4 = vld [vmem:[%s5450_s10 + $0xa30] ss:$8 sps:$4 sm:$0xff]  }
 0x16f   : > { %3336 = vmatpush1.bf16.msra.mxu0 %v4713_v5  ;;  %3091 = vmatprep.subr.bf16.mxu1 %v4718_v6  ;;  %v4796_v5 = vld [vmem:[%s5450_s10 + $0x444] ss:$8 sps:$4 sm:$0xff]  }
 0x170   : > { %3337 = vmatprep.subr.bf16.mxu0 %v4721_v7  ;;  %v4799_v6 = vld [vmem:[%s5450_s10 + $0xa44] ss:$8 sps:$4 sm:$0xff]   ;;  %v4794_v7 = vld [vmem:[%s5450_s10 + $0x440] ss:$8 sps:$4 sm:$0xff]  }
 0x172   : > { %3092 = vmatpush1.bf16.msra.mxu1 %v4716_v8  ;;  %v4797_v8 = vld [vmem:[%s5450_s10 + $0xa40] ss:$8 sps:$4 sm:$0xff]  }
 0x173   : > { %3338 = vmatpush1.bf16.msra.mxu0 %v4719_v9  ;;  %3093 = vmatprep.subr.bf16.mxu1 %v4724_v10  ;;  %v4802_v9 = vld [vmem:[%s5450_s10 + $0x454] ss:$8 sps:$4 sm:$0xff]  }
 0x174   : > { %3339 = vmatprep.subr.bf16.mxu0 %v4727_v11  ;;  %v4805_v10 = vld [vmem:[%s5450_s10 + $0xa54] ss:$8 sps:$4 sm:$0xff]   ;;  %v4800_v11 = vld [vmem:[%s5450_s10 + $0x450] ss:$8 sps:$4 sm:$0xff]  }
 0x176   : > { %3094 = vmatpush1.bf16.msra.mxu1 %v4722_v12  ;;  %v4803_v12 = vld [vmem:[%s5450_s10 + $0xa50] ss:$8 sps:$4 sm:$0xff]  }
 0x177   : > { %3340 = vmatpush1.bf16.msra.mxu0 %v4725_v13  ;;  %3095 = vmatprep.subr.bf16.mxu1 %v4730_v14  ;;  %v4808_v13 = vld [vmem:[%s5450_s10 + $0x464] ss:$8 sps:$4 sm:$0xff]  }
 0x178   : > { %3341 = vmatprep.subr.bf16.mxu0 %v4733_v15  ;;  %v4811_v14 = vld [vmem:[%s5450_s10 + $0xa64] ss:$8 sps:$4 sm:$0xff]   ;;  %v4806_v15 = vld [vmem:[%s5450_s10 + $0x460] ss:$8 sps:$4 sm:$0xff]  }
 0x17a   : > { %3096 = vmatpush1.bf16.msra.mxu1 %v4728_v16  ;;  %v4809_v16 = vld [vmem:[%s5450_s10 + $0xa60] ss:$8 sps:$4 sm:$0xff]  }
 0x17b   : > { %3342 = vmatpush1.bf16.msra.mxu0 %v4731_v17  ;;  %3097 = vmatprep.subr.bf16.mxu1 %v4736_v20  ;;  %v4814_v17 = vld [vmem:[%s5450_s10 + $0x474] ss:$8 sps:$4 sm:$0xff]  }
 0x17c   : > { %3343 = vmatprep.subr.bf16.mxu0 %v4739_v21  ;;  %v4817_v20 = vld [vmem:[%s5450_s10 + $0xa74] ss:$8 sps:$4 sm:$0xff]   ;;  %v4812_v21 = vld [vmem:[%s5450_s10 + $0x470] ss:$8 sps:$4 sm:$0xff]  }
 0x17e   : > { %3098 = vmatpush1.bf16.msra.mxu1 %v4734_v22  ;;  %v4815_v22 = vld [vmem:[%s5450_s10 + $0xa70] ss:$8 sps:$4 sm:$0xff]  }
 0x17f   : > { %3344 = vmatpush1.bf16.msra.mxu0 %v4737_v23  ;;  %3099 = vmatprep.subr.bf16.mxu1 %v4742_v25  ;;  %v4820_v23 = vld [vmem:[%s5450_s10 + $0x484] ss:$8 sps:$4 sm:$0xff]  }
 0x180   : > { %3345 = vmatprep.subr.bf16.mxu0 %v4745_v53  ;;  %v4823_v25 = vld [vmem:[%s5450_s10 + $0xa84] ss:$8 sps:$4 sm:$0xff]   ;;  %v4818_v53 = vld [vmem:[%s5450_s10 + $0x480] ss:$8 sps:$4 sm:$0xff]  }
 0x182   : > { %3100 = vmatpush1.bf16.msra.mxu1 %v4740_v26  ;;  %v4821_v26 = vld [vmem:[%s5450_s10 + $0xa80] ss:$8 sps:$4 sm:$0xff]  }
 0x183   : > { %3346 = vmatpush1.bf16.msra.mxu0 %v4743_v27  ;;  %3101 = vmatprep.subr.bf16.mxu1 %v4748_v28  ;;  %v4826_v27 = vld [vmem:[%s5450_s10 + $0x494] ss:$8 sps:$4 sm:$0xff]  }
 0x184   : > { %3347 = vmatprep.subr.bf16.mxu0 %v4751_v29  ;;  %v4829_v28 = vld [vmem:[%s5450_s10 + $0xa94] ss:$8 sps:$4 sm:$0xff]   ;;  %v4824_v29 = vld [vmem:[%s5450_s10 + $0x490] ss:$8 sps:$4 sm:$0xff]  }
 0x186   : > { %3102 = vmatpush1.bf16.msra.mxu1 %v4746_v30  ;;  %v4827_v30 = vld [vmem:[%s5450_s10 + $0xa90] ss:$8 sps:$4 sm:$0xff]  }
 0x187   : > { %3348 = vmatpush1.bf16.msra.mxu0 %v4749_v31  ;;  %3103 = vmatprep.subr.bf16.mxu1 %v4754_v32  ;;  %v4832_v31 = vld [vmem:[%s5450_s10 + $0x4a4] ss:$8 sps:$4 sm:$0xff]  }
 0x188   : > { %3349 = vmatprep.subr.bf16.mxu0 %v4757_v33  ;;  %v4835_v32 = vld [vmem:[%s5450_s10 + $0xaa4] ss:$8 sps:$4 sm:$0xff]   ;;  %v4830_v33 = vld [vmem:[%s5450_s10 + $0x4a0] ss:$8 sps:$4 sm:$0xff]  }
 0x18a   : > { %3104 = vmatpush1.bf16.msra.mxu1 %v4752_v34  ;;  %v4833_v34 = vld [vmem:[%s5450_s10 + $0xaa0] ss:$8 sps:$4 sm:$0xff]  }
 0x18b   : > { %3350 = vmatpush1.bf16.msra.mxu0 %v4755_v18  ;;  %3105 = vmatprep.subr.bf16.mxu1 %v4760_v37  ;;  %v4838_v18 = vld [vmem:[%s5450_s10 + $0x4b4] ss:$8 sps:$4 sm:$0xff]  }
 0x18c   : > { %3351 = vmatprep.subr.bf16.mxu0 %v4763_v38  ;;  %v4841_v37 = vld [vmem:[%s5450_s10 + $0xab4] ss:$8 sps:$4 sm:$0xff]   ;;  %v4836_v38 = vld [vmem:[%s5450_s10 + $0x4b0] ss:$8 sps:$4 sm:$0xff]  }
 0x18e   : > { %3106 = vmatpush1.bf16.msra.mxu1 %v4758_v40  ;;  %v4844_v40 = vld [vmem:[%s5450_s10 + $0x4c4] ss:$8 sps:$4 sm:$0xff]  }
 0x18f   : > { %3352 = vmatpush1.bf16.msra.mxu0 %v4761_v45  ;;  %3107 = vmatprep.subr.bf16.mxu1 %v4766_v46  ;;  %v4847_v45 = vld [vmem:[%s5450_s10 + $0xac4] ss:$8 sps:$4 sm:$0xff]   ;;  %v4842_v46 = vld [vmem:[%s5450_s10 + $0x4c0] ss:$8 sps:$4 sm:$0xff]  }
 0x190   : > { %3353 = vmatprep.subr.bf16.mxu0 %v4769_v47  ;;  %v4845_v47 = vld [vmem:[%s5450_s10 + $0xac0] ss:$8 sps:$4 sm:$0xff]  }
 0x192   : > { %3108 = vmatpush1.bf16.msra.mxu1 %v4764_v19  ;;  %v4850_v19 = vld [vmem:[%s5450_s10 + $0x4d4] ss:$8 sps:$4 sm:$0xff]  }
 0x193   : > { %3354 = vmatpush1.bf16.msra.mxu0 %v4767_v36  ;;  %3118 = vmatprep.subr.bf16.mxu1 %v4772_v49  ;;  %v4853_v36 = vld [vmem:[%s5450_s10 + $0xad4] ss:$8 sps:$4 sm:$0xff]   ;;  %v4848_v49 = vld [vmem:[%s5450_s10 + $0x4d0] ss:$8 sps:$4 sm:$0xff]  }
 0x194   : > { %3364 = vmatprep.subr.bf16.mxu0 %v4775_v51  ;;  %v4851_v51 = vld [vmem:[%s5450_s10 + $0xad0] ss:$8 sps:$4 sm:$0xff]  }
 0x195   : > { %3110 = vmatmul.mubr.bf16.vlgmr.msra.gmra.mrb[0].mxu1 %v814_v54  ;;  %v4857_v54 = vld [vmem:[%s5450_s10 + $0xae0] ss:$8 sps:$4 sm:$0xff]  }
 0x196   : > { %3356 = vmatmul.mubr.bf16.vlgmr.msra.gmra.mrb[0].mxu0 %v911_v55  ;;  %3119 = vmatpush1.bf16.msra.mxu1 %v4770_v52  ;;  %v4854_v52 = vld [vmem:[%s5450_s10 + $0x4e0] ss:$8 sps:$4 sm:$0xff]   ;;  %v4862_v55 = vld [vmem:[%s5450_s10 + $0x4f4] ss:$8 sps:$4 sm:$0xff]  }
 0x197   : > { %3365 = vmatpush1.bf16.msra.mxu0 %v4773_v56  ;;  %3120 = vmatprep.subr.bf16.mxu1 %v4778_v57  ;;  %v4865_v56 = vld [vmem:[%s5450_s10 + $0xaf4] ss:$8 sps:$4 sm:$0xff]   ;;  %v4860_v57 = vld [vmem:[%s5450_s10 + $0x4f0] ss:$8 sps:$4 sm:$0xff]  }
 0x198   : > { %3366 = vmatprep.subr.bf16.mxu0 %v4781_v58  ;;  %3150 = vmatprep.mubr.bf16.mxu1 %v5811_v61  ;;  %v4863_v58 = vld [vmem:[%s5450_s10 + $0xaf0] ss:$8 sps:$4 sm:$0xff]  }
 0x199   : > { %3396 = vmatprep.mubr.bf16.mxu0 %v5814_v41 }
 0x19a   : > { %3121 = vmatpush1.bf16.msra.mxu1 %v4776_v59  ;;  %v4868_v59 = vld [vmem:[%s5450_s10 + $0x504] ss:$8 sps:$4 sm:$0xff]  }
 0x19b   : > { %3367 = vmatpush1.bf16.msra.mxu0 %v4779_v60  ;;  %3122 = vmatprep.subr.bf16.mxu1 %v4784_v44  ;;  %v4872_v60 = vld [vmem:[%s5450_s10 + $0xb04] ss:$8 sps:$4 sm:$0xff]   ;;  %v5878_v44 = vrot.slane %v5787_v48, %v5517_v50  ;;  %v864_v48 = vcombine.high %v5811_v61, %v5811_v61 }
 0x19c   : > { %3368 = vmatprep.subr.bf16.mxu0 %v4787_v62  ;;  %v5882_v62 = vrot.slane %v5790_v24, %v5517_v50  ;;  %v4873_v24 = vld [vmem:[%s5450_s10 + $0x510] ss:$8 sps:$4 sm:$0xff]   ;;  %v4881_v61 = vld [vmem:[%s5450_s10 + $0x524] ss:$8 sps:$4 sm:$0xff]  }
 0x19e   : > { %3123 = vmatpush1.bf16.msra.mxu1 %v4782_v63  ;;  %v4866_v63 = vld [vmem:[%s5450_s10 + $0x500] ss:$8 sps:$4 sm:$0xff]  }
 0x19f   : > { %3369 = vmatpush1.bf16.msra.mxu0 %v4785_v0  ;;  %3124 = vmatprep.subr.bf16.mxu1 %v4790_v1  ;;  %v4870_v0 = vld [vmem:[%s5450_s10 + $0xb00] ss:$8 sps:$4 sm:$0xff]   ;;  %v4875_v1 = vld [vmem:[%s5450_s10 + $0x514] ss:$8 sps:$4 sm:$0xff]  }
 0x1a0   : > { %3370 = vmatprep.subr.bf16.mxu0 %v4793_v2  ;;  %v4878_v2 = vld [vmem:[%s5450_s10 + $0xb14] ss:$8 sps:$4 sm:$0xff]  }
 0x1a2   : > { %3125 = vmatpush1.bf16.msra.mxu1 %v4788_v3  ;;  %v914_v3 = vcombine.high %v5814_v41, %v5814_v41  ;;  %v4879_v41 = vld [vmem:[%s5450_s10 + $0x520] ss:$8 sps:$4 sm:$0xff]  }
 0x1a3   : > { %3371 = vmatpush1.bf16.msra.mxu0 %v4791_v4  ;;  %3126 = vmatprep.subr.bf16.mxu1 %v4796_v5  ;;  %v4876_v4 = vld [vmem:[%s5450_s10 + $0xb10] ss:$8 sps:$4 sm:$0xff]   ;;  %v4884_v5 = vld [vmem:[%s5450_s10 + $0xb24] ss:$8 sps:$4 sm:$0xff]  }
 0x1a4   : > { %3372 = vmatprep.subr.bf16.mxu0 %v4799_v6  ;;  %v4882_v6 = vld [vmem:[%s5450_s10 + $0xb20] ss:$8 sps:$4 sm:$0xff]  }
 0x1a6   : > { %3127 = vmatpush1.bf16.msra.mxu1 %v4794_v7  ;;  %v4887_v7 = vld [vmem:[%s5450_s10 + $0x534] ss:$8 sps:$4 sm:$0xff]  }
 0x1a7   : > { %3373 = vmatpush1.bf16.msra.mxu0 %v4797_v8  ;;  %3128 = vmatprep.subr.bf16.mxu1 %v4802_v9  ;;  %v4890_v8 = vld [vmem:[%s5450_s10 + $0xb34] ss:$8 sps:$4 sm:$0xff]   ;;  %v4885_v9 = vld [vmem:[%s5450_s10 + $0x530] ss:$8 sps:$4 sm:$0xff]  }
 0x1a8   : > { %3374 = vmatprep.subr.bf16.mxu0 %v4805_v10  ;;  %v4888_v10 = vld [vmem:[%s5450_s10 + $0xb30] ss:$8 sps:$4 sm:$0xff]  }
 0x1aa   : > { %3129 = vmatpush1.bf16.msra.mxu1 %v4800_v11  ;;  %v4893_v11 = vld [vmem:[%s5450_s10 + $0x544] ss:$8 sps:$4 sm:$0xff]  }
 0x1ab   : > { %3375 = vmatpush1.bf16.msra.mxu0 %v4803_v12  ;;  %3130 = vmatprep.subr.bf16.mxu1 %v4808_v13  ;;  %v4896_v12 = vld [vmem:[%s5450_s10 + $0xb44] ss:$8 sps:$4 sm:$0xff]   ;;  %v4891_v13 = vld [vmem:[%s5450_s10 + $0x540] ss:$8 sps:$4 sm:$0xff]  }
 0x1ac   : > { %3376 = vmatprep.subr.bf16.mxu0 %v4811_v14  ;;  %v4894_v14 = vld [vmem:[%s5450_s10 + $0xb40] ss:$8 sps:$4 sm:$0xff]  }
 0x1ae   : > { %3131 = vmatpush1.bf16.msra.mxu1 %v4806_v15  ;;  %v4899_v15 = vld [vmem:[%s5450_s10 + $0x554] ss:$8 sps:$4 sm:$0xff]  }
 0x1af   : > { %3377 = vmatpush1.bf16.msra.mxu0 %v4809_v16  ;;  %3132 = vmatprep.subr.bf16.mxu1 %v4814_v17  ;;  %v4902_v16 = vld [vmem:[%s5450_s10 + $0xb54] ss:$8 sps:$4 sm:$0xff]   ;;  %v4897_v17 = vld [vmem:[%s5450_s10 + $0x550] ss:$8 sps:$4 sm:$0xff]  }
 0x1b0   : > { %3378 = vmatprep.subr.bf16.mxu0 %v4817_v20  ;;  %v4900_v20 = vld [vmem:[%s5450_s10 + $0xb50] ss:$8 sps:$4 sm:$0xff]  }
 0x1b2   : > { %3133 = vmatpush1.bf16.msra.mxu1 %v4812_v21  ;;  %v4905_v21 = vld [vmem:[%s5450_s10 + $0x564] ss:$8 sps:$4 sm:$0xff]  }
 0x1b3   : > { %3379 = vmatpush1.bf16.msra.mxu0 %v4815_v22  ;;  %3134 = vmatprep.subr.bf16.mxu1 %v4820_v23  ;;  %v4908_v22 = vld [vmem:[%s5450_s10 + $0xb64] ss:$8 sps:$4 sm:$0xff]   ;;  %v4903_v23 = vld [vmem:[%s5450_s10 + $0x560] ss:$8 sps:$4 sm:$0xff]  }
 0x1b4   : > { %3380 = vmatprep.subr.bf16.mxu0 %v4823_v25  ;;  %v4906_v25 = vld [vmem:[%s5450_s10 + $0xb60] ss:$8 sps:$4 sm:$0xff]  }
 0x1b6   : > { %3135 = vmatpush1.bf16.msra.mxu1 %v4818_v53  ;;  %v4911_v53 = vld [vmem:[%s5450_s10 + $0x574] ss:$8 sps:$4 sm:$0xff]  }
 0x1b7   : > { %3381 = vmatpush1.bf16.msra.mxu0 %v4821_v26  ;;  %3136 = vmatprep.subr.bf16.mxu1 %v4826_v27  ;;  %v4914_v26 = vld [vmem:[%s5450_s10 + $0xb74] ss:$8 sps:$4 sm:$0xff]   ;;  %v4909_v27 = vld [vmem:[%s5450_s10 + $0x570] ss:$8 sps:$4 sm:$0xff]  }
 0x1b8   : > { %3382 = vmatprep.subr.bf16.mxu0 %v4829_v28  ;;  %v4912_v28 = vld [vmem:[%s5450_s10 + $0xb70] ss:$8 sps:$4 sm:$0xff]  }
 0x1ba   : > { %3137 = vmatpush1.bf16.msra.mxu1 %v4824_v29  ;;  %v4917_v29 = vld [vmem:[%s5450_s10 + $0x584] ss:$8 sps:$4 sm:$0xff]  }
 0x1bb   : > { %3383 = vmatpush1.bf16.msra.mxu0 %v4827_v30  ;;  %3138 = vmatprep.subr.bf16.mxu1 %v4832_v31  ;;  %v4920_v30 = vld [vmem:[%s5450_s10 + $0xb84] ss:$8 sps:$4 sm:$0xff]   ;;  %v4915_v31 = vld [vmem:[%s5450_s10 + $0x580] ss:$8 sps:$4 sm:$0xff]  }
 0x1bc   : > { %3384 = vmatprep.subr.bf16.mxu0 %v4835_v32  ;;  %v4918_v32 = vld [vmem:[%s5450_s10 + $0xb80] ss:$8 sps:$4 sm:$0xff]  }
 0x1be   : > { %3139 = vmatpush1.bf16.msra.mxu1 %v4830_v33  ;;  %v4923_v33 = vld [vmem:[%s5450_s10 + $0x594] ss:$8 sps:$4 sm:$0xff]  }
 0x1bf   : > { %3385 = vmatpush1.bf16.msra.mxu0 %v4833_v34  ;;  %3140 = vmatprep.subr.bf16.mxu1 %v4838_v18  ;;  %v4926_v34 = vld [vmem:[%s5450_s10 + $0xb94] ss:$8 sps:$4 sm:$0xff]   ;;  %v4921_v18 = vld [vmem:[%s5450_s10 + $0x590] ss:$8 sps:$4 sm:$0xff]  }
 0x1c0   : > { %3386 = vmatprep.subr.bf16.mxu0 %v4841_v37  ;;  %v4924_v37 = vld [vmem:[%s5450_s10 + $0xb90] ss:$8 sps:$4 sm:$0xff]  }
 0x1c2   : > { %3141 = vmatpush1.bf16.msra.mxu1 %v4836_v38  ;;  %v4929_v38 = vld [vmem:[%s5450_s10 + $0x5a4] ss:$8 sps:$4 sm:$0xff]  }
 0x1c3   : > { %3387 = vmatpush1.bf16.msra.mxu0 %v4839_v39  ;;  %3142 = vmatprep.subr.bf16.mxu1 %v4844_v40  ;;  %v4932_v39 = vld [vmem:[%s5450_s10 + $0xba4] ss:$8 sps:$4 sm:$0xff]   ;;  %v4927_v40 = vld [vmem:[%s5450_s10 + $0x5a0] ss:$8 sps:$4 sm:$0xff]  }
 0x1c4   : > { %3388 = vmatprep.subr.bf16.mxu0 %v4847_v45  ;;  %v4930_v45 = vld [vmem:[%s5450_s10 + $0xba0] ss:$8 sps:$4 sm:$0xff]  }
 0x1c6   : > { %3143 = vmatpush1.bf16.msra.mxu1 %v4842_v46  ;;  %v4935_v46 = vld [vmem:[%s5450_s10 + $0x5b4] ss:$8 sps:$4 sm:$0xff]  }
 0x1c7   : > { %3389 = vmatpush1.bf16.msra.mxu0 %v4845_v47  ;;  %3144 = vmatprep.subr.bf16.mxu1 %v4850_v19  ;;  %v4938_v47 = vld [vmem:[%s5450_s10 + $0xbb4] ss:$8 sps:$4 sm:$0xff]   ;;  %v4933_v19 = vld [vmem:[%s5450_s10 + $0x5b0] ss:$8 sps:$4 sm:$0xff]  }
 0x1c8   : > { %3390 = vmatprep.subr.bf16.mxu0 %v4853_v36  ;;  %v4936_v36 = vld [vmem:[%s5450_s10 + $0xbb0] ss:$8 sps:$4 sm:$0xff]  }
 0x1ca   : > { %3145 = vmatpush1.bf16.msra.mxu1 %v4848_v49  ;;  %v4941_v49 = vld [vmem:[%s5450_s10 + $0x5c4] ss:$8 sps:$4 sm:$0xff]  }
 0x1cb   : > { %3391 = vmatpush1.bf16.msra.mxu0 %v4851_v51  ;;  %3146 = vmatprep.subr.bf16.mxu1 %v4856_v35  ;;  %v4944_v51 = vld [vmem:[%s5450_s10 + $0xbc4] ss:$8 sps:$4 sm:$0xff]   ;;  %v4939_v35 = vld [vmem:[%s5450_s10 + $0x5c0] ss:$8 sps:$4 sm:$0xff]  }
 0x1cc   : > { %3392 = vmatprep.subr.bf16.mxu0 %v4859_v42  ;;  %v4942_v42 = vld [vmem:[%s5450_s10 + $0xbc0] ss:$8 sps:$4 sm:$0xff]  }
 0x1ce   : > { %3147 = vmatpush1.bf16.msra.mxu1 %v4854_v52  ;;  %v4947_v52 = vld [vmem:[%s5450_s10 + $0x5d4] ss:$8 sps:$4 sm:$0xff]  }
 0x1cf   : > { %3393 = vmatpush1.bf16.msra.mxu0 %v4857_v54  ;;  %3148 = vmatprep.subr.bf16.mxu1 %v4862_v55  ;;  %v4950_v54 = vld [vmem:[%s5450_s10 + $0xbd4] ss:$8 sps:$4 sm:$0xff]   ;;  %v4945_v55 = vld [vmem:[%s5450_s10 + $0x5d0] ss:$8 sps:$4 sm:$0xff]  }
 0x1d0   : > { %3394 = vmatprep.subr.bf16.mxu0 %v4865_v56  ;;  %v4948_v56 = vld [vmem:[%s5450_s10 + $0xbd0] ss:$8 sps:$4 sm:$0xff]  }
 0x1d2   : > { %3149 = vmatpush1.bf16.msra.mxu1 %v4860_v57  ;;  %v4953_v57 = vld [vmem:[%s5450_s10 + $0x5e4] ss:$8 sps:$4 sm:$0xff]  }
 0x1d3   : > { %3395 = vmatpush1.bf16.msra.mxu0 %v4863_v58  ;;  %3159 = vmatprep.subr.bf16.mxu1 %v4868_v59  ;;  %v4956_v58 = vld [vmem:[%s5450_s10 + $0xbe4] ss:$8 sps:$4 sm:$0xff]   ;;  %v4951_v59 = vld [vmem:[%s5450_s10 + $0x5e0] ss:$8 sps:$4 sm:$0xff]  }
 0x1d4   : > { %3405 = vmatprep.subr.bf16.mxu0 %v4872_v60  ;;  %v4954_v60 = vld [vmem:[%s5450_s10 + $0xbe0] ss:$8 sps:$4 sm:$0xff]  }
 0x1d5   : > { %3151 = vmatmul.mubr.bf16.vlgmr.msra.gmra.mrb[0].mxu1 %v5878_v44 }
 0x1d6   : > { %3397 = vmatmul.mubr.bf16.vlgmr.msra.gmra.mrb[0].mxu0 %v5882_v62  ;;  %3160 = vmatpush1.bf16.msra.mxu1 %v4866_v63  ;;  %v4959_v63 = vld [vmem:[%s5450_s10 + $0x5f4] ss:$8 sps:$4 sm:$0xff]  }
 0x1d7   : > { %3406 = vmatpush1.bf16.msra.mxu0 %v4870_v0  ;;  %3161 = vmatprep.subr.bf16.mxu1 %v4875_v1  ;;  %v4962_v0 = vld [vmem:[%s5450_s10 + $0xbf4] ss:$8 sps:$4 sm:$0xff]   ;;  %v4957_v1 = vld [vmem:[%s5450_s10 + $0x5f0] ss:$8 sps:$4 sm:$0xff]  }
 0x1d8   : > { %3407 = vmatprep.subr.bf16.mxu0 %v4878_v2  ;;  %3191 = vmatprep.mubr.bf16.mxu1 %v864_v48  ;;  %v4960_v2 = vld [vmem:[%s5450_s10 + $0xbf0] ss:$8 sps:$4 sm:$0xff]   ;;  %v4965_v48 = vld [vmem:[%s5450_s10 + $0xc04] ss:$8 sps:$4 sm:$0xff]  }
 0x1d9   : > { %3437 = vmatprep.mubr.bf16.mxu0 %v914_v3  ;;  %v862_v3 = vcombine.high %v5878_v44, %v5878_v44  ;;  %v4971_v44 = vld [vmem:[%s5450_s10 + $0xc24] ss:$8 sps:$4 sm:$0xff]  }
 0x1da   : > { %3162 = vmatpush1.bf16.msra.mxu1 %v4873_v24  ;;  %v912_v24 = vcombine.high %v5882_v62, %v5882_v62  ;;  %v4969_v62 = vld [vmem:[%s5450_s10 + $0xc20] ss:$8 sps:$4 sm:$0xff]  }
 0x1db   : > { %3408 = vmatpush1.bf16.msra.mxu0 %v4876_v4  ;;  %3163 = vmatprep.subr.bf16.mxu1 %v4881_v61  ;;  %v4963_v4 = vld [vmem:[%s5450_s10 + $0xc00] ss:$8 sps:$4 sm:$0xff]   ;;  %v4968_v61 = vld [vmem:[%s5450_s10 + $0xc14] ss:$8 sps:$4 sm:$0xff]  }
 0x1dc   : > { %3409 = vmatprep.subr.bf16.mxu0 %v4884_v5  ;;  %v4966_v5 = vld [vmem:[%s5450_s10 + $0xc10] ss:$8 sps:$4 sm:$0xff]  }
 0x1de   : > { %3164 = vmatpush1.bf16.msra.mxu1 %v4879_v41  ;;  %v5208_v41 = vmov 0  }
 0x1df   : > { %3410 = vmatpush1.bf16.msra.mxu0 %v4882_v6  ;;  %3165 = vmatprep.subr.bf16.mxu1 %v4887_v7  ;;  %v4974_v6 = vld [vmem:[%s5450_s10 + $0xc34] ss:$8 sps:$4 sm:$0xff]   ;;  %v4972_v7 = vld [vmem:[%s5450_s10 + $0xc30] ss:$8 sps:$4 sm:$0xff]  }
 0x1e0   : > { %3411 = vmatprep.subr.bf16.mxu0 %v4890_v8  ;;  %v4977_v8 = vld [vmem:[%s5450_s10 + $0xc44] ss:$8 sps:$4 sm:$0xff]  }
 0x1e2   : > { %3166 = vmatpush1.bf16.msra.mxu1 %v4885_v9  ;;  %v4975_v9 = vld [vmem:[%s5450_s10 + $0xc40] ss:$8 sps:$4 sm:$0xff]  }
 0x1e3   : > { %3412 = vmatpush1.bf16.msra.mxu0 %v4888_v10  ;;  %3167 = vmatprep.subr.bf16.mxu1 %v4893_v11  ;;  %v4980_v10 = vld [vmem:[%s5450_s10 + $0xc54] ss:$8 sps:$4 sm:$0xff]   ;;  %v4978_v11 = vld [vmem:[%s5450_s10 + $0xc50] ss:$8 sps:$4 sm:$0xff]  }
 0x1e4   : > { %3413 = vmatprep.subr.bf16.mxu0 %v4896_v12  ;;  %v4983_v12 = vld [vmem:[%s5450_s10 + $0xc64] ss:$8 sps:$4 sm:$0xff]  }
 0x1e6   : > { %3168 = vmatpush1.bf16.msra.mxu1 %v4891_v13  ;;  %v4981_v13 = vld [vmem:[%s5450_s10 + $0xc60] ss:$8 sps:$4 sm:$0xff]  }
 0x1e7   : > { %3414 = vmatpush1.bf16.msra.mxu0 %v4894_v14  ;;  %3169 = vmatprep.subr.bf16.mxu1 %v4899_v15  ;;  %v4986_v14 = vld [vmem:[%s5450_s10 + $0xc74] ss:$8 sps:$4 sm:$0xff]   ;;  %v4984_v15 = vld [vmem:[%s5450_s10 + $0xc70] ss:$8 sps:$4 sm:$0xff]  }
 0x1e8   : > { %3415 = vmatprep.subr.bf16.mxu0 %v4902_v16  ;;  %v3764_v16 = vld.sshfl [vmem:[#allocation3 + $0x18] sm:$0x1 pattern:$0x75316420] }
 0x1ea   : > { %3170 = vmatpush1.bf16.msra.mxu1 %v4897_v17  ;;  %v928_v17 = vrot.slane %v3764_v16, %v5517_v50  ;;  %v3510_v50 = vld [vmem:[%s5467_s16 + $0xa0] sm:$0xff] }
 0x1eb   : > { %3416 = vmatpush1.bf16.msra.mxu0 %v4900_v20  ;;  %3171 = vmatprep.subr.bf16.mxu1 %v4905_v21  ;;  %v3506_v20 = vld [vmem:[%s5467_s16 + $0x80] sm:$0xff]  ;;  %v3507_v21 = vld [vmem:[%s5467_s16 + $0x88] sm:$0xff] }
 0x1ec   : > { %3417 = vmatprep.subr.bf16.mxu0 %v4908_v22  ;;  %v3490_v22 = vld [vmem:[%s5467_s16] sm:$0xff] }
 0x1ee   : > { %3172 = vmatpush1.bf16.msra.mxu1 %v4903_v23  ;;  %v4208_v23 = vpack.c.bf16 %v3507_v21, %v3506_v20 }
 0x1ef   : > { %3418 = vmatpush1.bf16.msra.mxu0 %v4906_v25  ;;  %3173 = vmatprep.subr.bf16.mxu1 %v4911_v53  ;;  %v3491_v25 = vld [vmem:[%s5467_s16 + $0x8] sm:$0xff]  ;;  %v3508_v53 = vld [vmem:[%s5467_s16 + $0x90] sm:$0xff] }
 0x1f0   : > { %3419 = vmatprep.subr.bf16.mxu0 %v4914_v26  ;;  %v3509_v26 = vld [vmem:[%s5467_s16 + $0x98] sm:$0xff] }
 0x1f2   : > { %3174 = vmatpush1.bf16.msra.mxu1 %v4909_v27  ;;  %v4210_v27 = vpack.c.bf16 %v3491_v25, %v3490_v22 }
 0x1f3   : > { %3420 = vmatpush1.bf16.msra.mxu0 %v4912_v28  ;;  %3175 = vmatprep.subr.bf16.mxu1 %v4917_v29  ;;  %v4212_v28 = vpack.c.bf16 %v3509_v26, %v3508_v53  ;;  %v3492_v29 = vld [vmem:[%s5467_s16 + $0x10] sm:$0xff]  ;;  %v3489_v53 = vld [vmem:[#allocation2] sm:$0x3] }
 0x1f4   : > { %3421 = vmatprep.subr.bf16.mxu0 %v4920_v30  ;;  %v3493_v30 = vld [vmem:[%s5467_s16 + $0x18] sm:$0xff] }
 0x1f6   : > { %3176 = vmatpush1.bf16.msra.mxu1 %v4915_v31  ;;  %v3511_v31 = vld [vmem:[%s5467_s16 + $0xa8] sm:$0xff] }
 0x1f7   : > { %3422 = vmatpush1.bf16.msra.mxu0 %v4918_v32  ;;  %3177 = vmatprep.subr.bf16.mxu1 %v4923_v33  ;;  %v4214_v32 = vpack.c.bf16 %v3493_v30, %v3492_v29  ;;  %v4216_v33 = vpack.c.bf16 %v3511_v31, %v3510_v50  ;;  %v4166_v29 = vld [vmem:[#allocation9] ss:$0 sm:$0xff] (!%p4165_p8) }
 0x1f8   : > { %3423 = vmatprep.subr.bf16.mxu0 %v4926_v34  ;;  %v3494_v34 = vld [vmem:[%s5467_s16 + $0x20] sm:$0xff] }
 0x1fa   : > { %3178 = vmatpush1.bf16.msra.mxu1 %v4921_v18  ;;  %v3495_v18 = vld [vmem:[%s5467_s16 + $0x28] sm:$0xff] }
 0x1fb   : > { %3424 = vmatpush1.bf16.msra.mxu0 %v4924_v37  ;;  %3179 = vmatprep.subr.bf16.mxu1 %v4929_v38  ;;  %v3512_v37 = vld [vmem:[%s5467_s16 + $0xb0] sm:$0xff]  ;;  %v3513_v38 = vld [vmem:[%s5467_s16 + $0xb8] sm:$0xff] }
 0x1fc   : > { %3425 = vmatprep.subr.bf16.mxu0 %v4932_v39  ;;  %v4218_v39 = vpack.c.bf16 %v3495_v18, %v3494_v34 }
 0x1fe   : > { %3180 = vmatpush1.bf16.msra.mxu1 %v4927_v40  ;;  %v4220_v40 = vpack.c.bf16 %v3513_v38, %v3512_v37 }
 0x1ff   : > { %3426 = vmatpush1.bf16.msra.mxu0 %v4930_v45  ;;  %3181 = vmatprep.subr.bf16.mxu1 %v4935_v46  ;;  %v3496_v45 = vld [vmem:[%s5467_s16 + $0x30] sm:$0xff]  ;;  %v3497_v46 = vld [vmem:[%s5467_s16 + $0x38] sm:$0xff] }
 0x200   : > { %3427 = vmatprep.subr.bf16.mxu0 %v4938_v47  ;;  %v3514_v47 = vld [vmem:[%s5467_s16 + $0xc0] sm:$0xff] }
 0x202   : > { %3182 = vmatpush1.bf16.msra.mxu1 %v4933_v19  ;;  %v3515_v19 = vld [vmem:[%s5467_s16 + $0xc8] sm:$0xff] }
 0x203   : > { %3428 = vmatpush1.bf16.msra.mxu0 %v4936_v36  ;;  %3183 = vmatprep.subr.bf16.mxu1 %v4941_v49  ;;  %v4222_v36 = vpack.c.bf16 %v3497_v46, %v3496_v45  ;;  %v4224_v49 = vpack.c.bf16 %v3515_v19, %v3514_v47 }
 0x204   : > { %3429 = vmatprep.subr.bf16.mxu0 %v4944_v51  ;;  %v3498_v51 = vld [vmem:[%s5467_s16 + $0x40] sm:$0xff] }
 0x206   : > { %3184 = vmatpush1.bf16.msra.mxu1 %v4939_v35  ;;  %v3499_v35 = vld [vmem:[%s5467_s16 + $0x48] sm:$0xff] }
 0x207   : > { %3430 = vmatpush1.bf16.msra.mxu0 %v4942_v42  ;;  %3185 = vmatprep.subr.bf16.mxu1 %v4947_v52  ;;  %v3516_v42 = vld [vmem:[%s5467_s16 + $0xd0] sm:$0xff]  ;;  %v3517_v52 = vld [vmem:[%s5467_s16 + $0xd8] sm:$0xff] }
 0x208   : > { %3431 = vmatprep.subr.bf16.mxu0 %v4950_v54  ;;  %v4226_v54 = vpack.c.bf16 %v3499_v35, %v3498_v51 }
 0x20a   : > { %3186 = vmatpush1.bf16.msra.mxu1 %v4945_v55  ;;  %v4228_v55 = vpack.c.bf16 %v3517_v52, %v3516_v42 }
 0x20b   : > { %3432 = vmatpush1.bf16.msra.mxu0 %v4948_v56  ;;  %3187 = vmatprep.subr.bf16.mxu1 %v4953_v57  ;;  %v3500_v56 = vld [vmem:[%s5467_s16 + $0x50] sm:$0xff]  ;;  %v3501_v57 = vld [vmem:[%s5467_s16 + $0x58] sm:$0xff] }
 0x20c   : > { %3433 = vmatprep.subr.bf16.mxu0 %v4956_v58  ;;  %v3518_v58 = vld [vmem:[%s5467_s16 + $0xe0] sm:$0xff] }
 0x20e   : > { %3188 = vmatpush1.bf16.msra.mxu1 %v4951_v59  ;;  %v3519_v59 = vld [vmem:[%s5467_s16 + $0xe8] sm:$0xff] }
 0x20f   : > { %3434 = vmatpush1.bf16.msra.mxu0 %v4954_v60  ;;  %3189 = vmatprep.subr.bf16.mxu1 %v4959_v63  ;;  %v4230_v60 = vpack.c.bf16 %v3501_v57, %v3500_v56  ;;  %v4232_v63 = vpack.c.bf16 %v3519_v59, %v3518_v58 }
 0x210   : > { %3435 = vmatprep.subr.bf16.mxu0 %v4962_v0  ;;  %v3502_v0 = vld [vmem:[%s5467_s16 + $0x60] sm:$0xff] }
 0x212   : > { %3190 = vmatpush1.bf16.msra.mxu1 %v4957_v1  ;;  %v3503_v1 = vld [vmem:[%s5467_s16 + $0x68] sm:$0xff] }
 0x213   : > { %3436 = vmatpush1.bf16.msra.mxu0 %v4960_v2  ;;  %4209 = vmatprep.subr.bf16.mxu1 %v4208_v23  ;;  %v4234_v2 = vpack.c.bf16 %v3503_v1, %v3502_v0 }
 0x214   : > { %3446 = vmatprep.subr.bf16.mxu0 %v4965_v48  ;;  %v3520_v48 = vld [vmem:[%s5467_s16 + $0xf0] sm:$0xff] }
 0x215   : > { %3192 = vmatmul.mubr.bf16.vlgmr.msra.gmra.mrb[0].mxu1 %v862_v3  ;;  %v3521_v3 = vld [vmem:[%s5467_s16 + $0xf8] sm:$0xff] }
 0x216   : > { %3438 = vmatmul.mubr.bf16.vlgmr.msra.gmra.mrb[0].mxu0 %v912_v24  ;;  %4211 = vmatpush3.bf16.msra.mxu1 %v4210_v27  ;;  %v4236_v24 = vpack.c.bf16 %v3521_v3, %v3520_v48 }
 0x217   : > { %3447 = vmatpush1.bf16.msra.mxu0 %v4963_v4  ;;  %3478 = vmatprep.mubr.bf16.mxu0 %v5208_v41  ;;  %v3504_v4 = vld [vmem:[%s5467_s16 + $0x70] sm:$0xff] }
 0x218   : > { %3448 = vmatprep.subr.bf16.mxu0 %v4968_v61  ;;  %4213 = vmatprep.subr.bf16.mxu1 %v4212_v28  ;;  %v3505_v61 = vld [vmem:[%s5467_s16 + $0x78] sm:$0xff] }
 0x21a   : > { %4215 = vmatpush3.bf16.msra.mxu1 %v4214_v32 }
 0x21b   : > { %3449 = vmatpush1.bf16.msra.mxu0 %v4966_v5  ;;  %4217 = vmatprep.subr.bf16.mxu1 %v4216_v33  ;;  %v4238_v5 = vpack.c.bf16 %v3505_v61, %v3504_v4 }
 0x21c   : > { %3450 = vmatprep.subr.bf16.mxu0 %v4971_v44 }
 0x21e   : > { %4219 = vmatpush3.bf16.msra.mxu1 %v4218_v39 }
 0x21f   : > { %3451 = vmatpush1.bf16.msra.mxu0 %v4969_v62  ;;  %4221 = vmatprep.subr.bf16.mxu1 %v4220_v40 }
 0x220   : > { %3452 = vmatprep.subr.bf16.mxu0 %v4974_v6 }
 0x222   : > { %4223 = vmatpush3.bf16.msra.mxu1 %v4222_v36 }
 0x223   : > { %3453 = vmatpush1.bf16.msra.mxu0 %v4972_v7  ;;  %4225 = vmatprep.subr.bf16.mxu1 %v4224_v49  ;;  %v756_v7 = vsub.s32 0, %v5509_v43 }
 0x224   : > { %3454 = vmatprep.subr.bf16.mxu0 %v4977_v8  ;;  %v752_v8 = vld [vmem:[%s297_s17] sm:$0x3] }
 0x226   : > { %4227 = vmatpush3.bf16.msra.mxu1 %v4226_v54 }
 0x227   : > { %3455 = vmatpush1.bf16.msra.mxu0 %v4975_v9  ;;  %4229 = vmatprep.subr.bf16.mxu1 %v4228_v55  ;;  %v760_v9 = vsub.s32 1, %v5509_v43 }
 0x228   : > { %3456 = vmatprep.subr.bf16.mxu0 %v4980_v10  ;;  %v757_v10 = vrot.slane %v752_v8, %v756_v7 }
 0x22a   : > { %4231 = vmatpush3.bf16.msra.mxu1 %v4230_v60 }
 0x22b   : > { %3457 = vmatpush1.bf16.msra.mxu0 %v4978_v11  ;;  %4233 = vmatprep.subr.bf16.mxu1 %v4232_v63  ;;  %v761_v11 = vrot.slane %v752_v8, %v760_v9 }
 0x22c   : > { %3458 = vmatprep.subr.bf16.mxu0 %v4983_v12 }
 0x22e   : > { %4235 = vmatpush3.bf16.msra.mxu1 %v4234_v2 }
 0x22f   : > { %3459 = vmatpush1.bf16.msra.mxu0 %v4981_v13  ;;  %4237 = vmatprep.subr.bf16.mxu1 %v4236_v24 }
 0x230   : > { %3460 = vmatprep.subr.bf16.mxu0 %v4986_v14 }
 0x232   : > { %4239 = vmatpush3.bf16.msra.mxu1 %v4238_v5 }
 0x233   : > { %3461 = vmatpush1.bf16.msra.mxu0 %v4984_v15 }
 0x236   : > { %3479 = vmatmul.mubr.bf16.vlgmr.msra.gmra.mrb[0].mxu0 %v928_v17 }
 0x2e8   : > { %v3193_v41 = vpop.f32.mrb[0].mxu1 }
 0x2e9   : > { %v3195_v44 = vpop.f32.mrb[1].mxu1  ;;  %v4240_v12 = vadd.f32 %v3193_v41, %v757_v10 }
 0x2ea   : > { %v3197_v62 = vpop.f32.mrb[2].mxu1  ;;  %v4242_v13 = vadd.f32 %v3195_v44, %v761_v11 }
 0x2eb   : > { %v3198_v6 = vpop.f32.mrb[3].mxu1 }
 0x309   : > { %v3480_v14 = vpop.f32.mrb[0].mxu0 }
 0x30a   : > { %v4241_v15 = vadd.f32 %v4240_v12, %v3480_v14  ;;  %v3482_v16 = vpop.f32.mrb[1].mxu0 }
 0x30b   : > { %v4243_v17 = vadd.f32 %v4242_v13, %v3482_v16  ;;  %v3484_v20 = vpop.f32.mrb[2].mxu0 }
 0x30c   : > { %v3485_v21 = vpop.f32.mrb[3].mxu0  ;;  %v3487_v23 = vmax.f32 %v4241_v15, 0.0 }
 0x30d   : > { %v3488_v22 = vmax.f32 %v4243_v17, 0.0 }
 0x30f   : > { %3586 = vmatprep.mubr.f32.mxu1 %v3488_v22 }
 0x310   : > { %3587 = vmatmul.mubr.f32.vlgmr.msra.gmra.mrb[4].mxu1 %v3487_v23 }
 0x3e3   : > { %v4205_v25 = vpop.f32.mrb[4].mxu1  ;;  %3598 = sbr.rel (%p4165_p8) target bundleno = 1328 (0x530), region = 64 }
 0x3e4   : > { %v4206_v26 = vpop.f32.mrb[5].mxu1 }
 0x3e5   : > { %v4207_v27 = vadd.f32 %v4206_v26, %v4205_v25 }
 0x3e7   : > { %v3592_v43 = vadd.f32 %v4207_v27, %v3489_v53 }
 0x3e9   : > { %3594 = vst.msk [vmem:[#allocation2] sm:$0x3] %vm3593_vm1, %v3592_v43 }
 0x3f0   : > { %v3599_v28 = vld [vmem:[#allocation2] sm:$0x3] }
 0x3f1   : > { %v3607_v30 = vadd.f32 %v4166_v29, %v3599_v28 }
 0x3f3   : > { %v3608_v50 = vsel %vm3593_vm1, %v3607_v30, -inf }
 0x3f4   : > { %3609 = vmax.xlane.f32.xlu0 %v3608_v50 }
 0x481   : > { %v3610_v31 = vpop.xlane.xlu0 %3609 }
 0x482   : > { %v3611_v32 = vsub.f32 %v3607_v30, %v3610_v31 }
 0x484   : > { %v3612_v33 = vmul.f32 1.442695, %v3611_v32 }
 0x486   : > { %4988 = vpow2.f32 %v3612_v33 }
 0x490   : > { %v4989_v34 = vpop.eup %4988 }
 0x491   : > { %v3614_v18 = vsel %vm3593_vm1, %v4989_v34, 0.0 }
 0x492   : > { %3615 = vadd.xlane.f32.xlu0 %v3614_v18 }
 0x51f   : > { %v3616_v37 = vpop.xlane.xlu0 %3615 }
 0x520   : > { %4990 = vlog2.f32 %v3616_v37 }
 0x52a   : > { %v4991_v38 = vpop.eup %4990 }
 0x52b   : > { %v3618_v39 = vmul.f32 0.6931472, %v4991_v38 }
 0x52d   : > { %v3619_v40 = vsub.f32 %v3611_v32, %v3618_v39 }
 0x52f   : > { %3620 = vst.msk [vmem:[#allocation11] sm:$0x3] %vm3593_vm1, %v3619_v40 }
 0x530 PF: > { %p4325_p9 = scmp.eq.s32.totalorder %s5328_s15, 3  ;;  %s5209_s21 = smov [#allocation11]  }
 0x531   : > { %s3630_s18 = sshll.u32 %s5209_s21, 4  ;;  %s3631_s18 = int_to_ptr.vmem [resolvable:$true] %s3630_s18 }
 0x532   : > { %s5109_s28 = scalar_lea.vmem %s3631_s18, 32  ;;  %p5116_p1 = scmp.lt.s32.totalorder %s3631_s18, %s3631_s18 }
 0x533   : > { %p5110_p13 = scmp.ne.s32.totalorder %s3631_s18, %s5109_s28  ;;  %p5117_p10 = scmp.lt.s32.totalorder %s5109_s28, %s5109_s28 }
 0x535   : > { %p5111_p2 = pnand %p5110_p13, %p4325_p9  ;;  %p5118_p4 = por %p5117_p10, %p5116_p1 }
 0x537   : > { %p5112_p0 = pneg %p5111_p2 }
 0x539   : > { %p5119_p7 = pnand %p5118_p4, %p5112_p0 }
 0x53b   : > { %5122 = shalt.err (!%p5119_p7)
}
 0x53c   : > { %s5123_s6 = scalar_lea.hbm %s6060_s5, 32 }
 0x53d   : > { %p5124_p3 = scmp.ne.s32.totalorder %s6060_s5, %s5123_s6  ;;  %p5129_p5 = scmp.lt.u32.totalorder %s5123_s6, %s6060_s5 }
 0x53f   : > { %p5125_p6 = pnand %p5124_p3, %p4325_p9 }
 0x541   : > { %p5126_p11 = pneg %p5125_p6 }
 0x543   : > { %p5131_p12 = pnand %p5129_p5, %p5126_p11 }
 0x545   : > { %5134 = shalt.err (!%p5131_p12)
}
 0x546   : > { %4303 = dma.vmem_to_hbm [thread:$0]  (%p4325_p9), %s3631_s18, 32, %s6060_s5, [#allocation5]  }
 0x547   : > { %5172 = dma.done.wait (%p4325_p9), [#allocation5], 32  }
 0x548   : > { %5174 = vsyncadd (%p4325_p9), [#allocation5], 4294967264 }
 0x549 PF: > { %s21_s23 = sadd.s32 1, %s5197_s23   ;;  %s6081_s10 = sld [smem:[#allocation16_spill]] }
 0x54a   : > { %p18_p8 = scmp.ge.s32.totalorder %s21_s23, 6   ;;  %s6082_s18 = smov %s5181_s19 }
 0x54b   : > { %s6083_s19 = smov %s5185_s20  ;;  %s6084_s20 = smov %s5284_s30 }
 0x54c   : > { %s6085_s21 = smov %s5193_s22  ;;  %20 = sbr.rel (!%p18_p8) target bundleno = 9 (0x9), region = 110 }
 0x54f   : > { %s6086_s22 = smov %s6081_s10 }
 0x553   :  { %3643 = vsyncpa [#allocation4], 1 }
 0x554   :  { %3645 = vsyncpa [#allocation4 + $0x1], 1 }
 0x555   :  { %3646 = vsyncpa [#allocation7], 1 }
 0x556   :  { %3648 = vsyncpa [#allocation7 + $0x1], 1 }
 0x557   :  { %3649 = vsyncpa [#allocation10], 1 }
 0x558   :  { %3650 = vsyncpa [#allocation5], 1 }
 0x559   :  { %3652 = vsyncpa [#allocation5 + $0x1], 1 }

</bundles_post_ra>
